<compile_context>
chip_gen: v7x
topology: tpu7x:2x2x1
jax: 0.10.0
libtpu: 0.0.40
codegen_flags: <defaults>
</compile_context>

<pallas_src>
import jax
import jax.numpy as jnp
import numpy as np
from jax import lax
from jax.experimental import pallas as pl
from jax.experimental.pallas import tpu as pltpu


# ----------------------------------------------------------------------------
# Pallas kernel: interleaved bidirectional GRU recurrence (masked / "packed")
# ----------------------------------------------------------------------------
def bigru_kernel(gi_ref, mask_ref, whh_ref, bhh_ref, out_ref, hn_ref):
    """
    gi_ref   : (T, Bt, 6H) f32  folded input gates; at step s: forward gates
               for position s and backward gates for position T-1-s, columns
               permuted to [r_f r_b | z_f z_b | n_f n_b].
    mask_ref : (T, Bt, 2H) f32  [m_f | m_b] validity masks (same step layout).
    whh_ref  : (2H, 6H) f32     block-diagonal recurrent weights (same perm).
    bhh_ref  : (1, 6H)  f32     recurrent biases (same perm).
    out_ref  : (T, Bt, 2H) f32  [fwd | bwd] per-position outputs.
    hn_ref   : (2, Bt, H) f32   final hidden state per direction.
    """
    T, Bt, H6 = gi_ref.shape
    H = H6 // 6
    H2 = 2 * H

    whh = whh_ref[...]
    # Hoist bias broadcast out of the (unrolled) loop — JAX does not CSE it.
    bhh = jnp.broadcast_to(bhh_ref[...], (Bt, H6))

    def step(s, h_cat):                               # h_cat: (Bt, 2H) = [h_f|h_b]
        gi = gi_ref[s]                                # (Bt, 6H)
        gh = jnp.dot(h_cat, whh,
                     preferred_element_type=jnp.float32) + bhh   # (Bt, 6H)
        sg = gi + gh
        r = jax.nn.sigmoid(sg[:, 0:H2])               # (Bt, 2H) [r_f | r_b]
        z = jax.nn.sigmoid(sg[:, H2:2 * H2])          # (Bt, 2H) [z_f | z_b]
        n = jnp.tanh(gi[:, 2 * H2:3 * H2] + r * gh[:, 2 * H2:3 * H2])
        h_new = (1.0 - z) * n + z * h_cat             # (Bt, 2H)

        m = mask_ref[s]                               # (Bt, 2H) [m_f | m_b]
        out = m * h_new                               # zeros at padded positions
        out_ref[s, :, pl.ds(0, H)] = out[:, 0:H]               # fwd @ pos s
        out_ref[T - 1 - s, :, pl.ds(H, H)] = out[:, H:H2]      # bwd @ pos T-1-s
        return h_cat + m * (h_new - h_cat)            # carry last valid state

    h_fin = lax.fori_loop(0, T, step, jnp.zeros((Bt, H2), jnp.float32),
                          unroll=True)
    hn_ref[0] = h_fin[:, 0:H]
    hn_ref[1] = h_fin[:, H:H2]


# ----------------------------------------------------------------------------
# Wrapper: fold embedding + input projection (XLA glue), build block-diag
# recurrent weights / masks, launch the kernel with a parallel batch grid.
# ----------------------------------------------------------------------------
def _perm_gates(a_f, a_b, H):
    """[r z n]_fwd, [r z n]_bwd  ->  [r_f r_b z_f z_b n_f n_b] (last axis)."""
    return jnp.concatenate(
        [a_f[..., 0:H], a_b[..., 0:H],
         a_f[..., H:2 * H], a_b[..., H:2 * H],
         a_f[..., 2 * H:3 * H], a_b[..., 2 * H:3 * H]], axis=-1)


def sentence_encoder_forward(x_ids, lengths, params):
    """x_ids: (B, T) int32 token ids; lengths: (B,) int32."""
    B, T = x_ids.shape
    emb = params["embedding"]                            # (V, E)
    H = params["wih_f"].shape[1] // 3

    # --- fold embedding lookup + input projection into one table gather ----
    proj_f = emb @ params["wih_f"] + params["bih_f"]     # (V, 3H)
    proj_b = emb @ params["wih_b"] + params["bih_b"]     # (V, 3H)
    gi_f = proj_f[x_ids]                                 # (B, T, 3H)
    gi_b = proj_b[x_ids][:, ::-1, :]                     # bwd gates, time-reversed
    gi = _perm_gates(gi_f, gi_b, H)                      # (B, T, 6H)
    gi = jnp.transpose(gi, (1, 0, 2)).astype(jnp.float32)    # (T, B, 6H)

    # --- block-diagonal recurrent weights: one MXU dot per recurrent step ---
    zero = jnp.zeros((H, H), jnp.float32)
    wf, wb = params["whh_f"], params["whh_b"]            # (H, 3H) each
    row_f = jnp.concatenate([wf[:, 0:H], zero, wf[:, H:2 * H], zero,
                             wf[:, 2 * H:3 * H], zero], axis=1)
    row_b = jnp.concatenate([zero, wb[:, 0:H], zero, wb[:, H:2 * H],
                             zero, wb[:, 2 * H:3 * H]], axis=1)
    whh_blk = jnp.concatenate([row_f, row_b], axis=0)    # (2H, 6H)
    bhh_cat = _perm_gates(params["bhh_f"], params["bhh_b"], H)   # (1, 6H)

    # --- validity masks (fwd covers position s, bwd covers position T-1-s) --
    t_idx = jnp.arange(T, dtype=jnp.int32)[:, None]      # (T, 1)
    lens = lengths.astype(jnp.int32)[None, :]            # (1, B)
    m_f = (t_idx < lens).astype(jnp.float32)             # (T, B)
    m_b = ((T - 1 - t_idx) < lens).astype(jnp.float32)   # (T, B)
    mask = jnp.concatenate(
        [jnp.broadcast_to(m_f[:, :, None], (T, B, H)),
         jnp.broadcast_to(m_b[:, :, None], (T, B, H))], axis=-1)  # (T, B, 2H)

    # --- batch grid (parallel -> megacore sharding on v7x; bounds VMEM) -----
    bt = 8 if (B > 8 and B % 8 == 0) else B
    grid = (pl.cdiv(B, bt),)

    out_tm, h_n = pl.pallas_call(
        bigru_kernel,
        out_shape=(
            jax.ShapeDtypeStruct((T, B, 2 * H), jnp.float32),
            jax.ShapeDtypeStruct((2, B, H), jnp.float32),
        ),
        grid=grid,
        in_specs=[
            pl.BlockSpec((T, bt, 6 * H), lambda i: (0, i, 0)),   # gi
            pl.BlockSpec((T, bt, 2 * H), lambda i: (0, i, 0)),   # mask
            pl.BlockSpec((2 * H, 6 * H), lambda i: (0, 0)),      # whh (resident)
            pl.BlockSpec((1, 6 * H), lambda i: (0, 0)),          # bhh (resident)
        ],
        out_specs=(
            pl.BlockSpec((T, bt, 2 * H), lambda i: (0, i, 0)),   # out
            pl.BlockSpec((2, bt, H), lambda i: (0, i, 0)),       # h_n
        ),
        compiler_params=pltpu.CompilerParams(
            dimension_semantics=("parallel",)),
    )(gi, mask, whh_blk, bhh_cat)

    # back to PyTorch batch-first layout: (B, T, 2H), fwd dir first then bwd.
    out = jnp.transpose(out_tm, (1, 0, 2))
    return out, h_n


# ----------------------------------------------------------------------------
# Deterministic parameter construction (mirrors nn.Embedding + nn.GRU shapes)
# ----------------------------------------------------------------------------
def init_params(key, vocab_size, embedding_size, hidden_size):
    E, H = embedding_size, hidden_size
    ks = jax.random.split(key, 9)
    scale = 1.0 / np.sqrt(H)

    def uniform(k, shape):
        return jax.random.uniform(k, shape, jnp.float32, -scale, scale)

    def orthogonal_hh(k):
        # weight_hh is (3H, H) in torch, orthogonal-initialized per gate block.
        blocks = []
        for kk in jax.random.split(k, 3):
            a = jax.random.normal(kk, (H, H), jnp.float32)
            q, r = jnp.linalg.qr(a)
            q = q * jnp.sign(jnp.diag(r))[None, :]
            blocks.append(q)
        return jnp.concatenate(blocks, axis=0)          # (3H, H)

    params = {
        "embedding": jax.random.normal(ks[0], (vocab_size, E), jnp.float32),
        # stored transposed so math is x @ W: (E, 3H) / (H, 3H)
        "wih_f": uniform(ks[1], (3 * H, E)).T,
        "whh_f": orthogonal_hh(ks[2]).T,
        "bih_f": uniform(ks[3], (1, 3 * H)),
        "bhh_f": uniform(ks[4], (1, 3 * H)),
        "wih_b": uniform(ks[5], (3 * H, E)).T,
        "whh_b": orthogonal_hh(ks[6]).T,
        "bih_b": uniform(ks[7], (1, 3 * H)),
        "bhh_b": uniform(ks[8], (1, 3 * H)),
    }
    return params


# ----------------------------------------------------------------------------
# Pure-JAX reference (same math, no Pallas) for a correctness check
# ----------------------------------------------------------------------------
def reference_forward(x_ids, lengths, params):
    B, T = x_ids.shape
    H = params["wih_f"].shape[1] // 3
    x = params["embedding"][x_ids]

    def cell(x_t, h, wih, whh, bih, bhh):
        gi = x_t @ wih + bih
        gh = h @ whh + bhh
        r = jax.nn.sigmoid(gi[:, :H] + gh[:, :H])
        z = jax.nn.sigmoid(gi[:, H:2 * H] + gh[:, H:2 * H])
        n = jnp.tanh(gi[:, 2 * H:] + r * gh[:, 2 * H:])
        return (1 - z) * n + z * h

    def run(direction):
        wih = params[f"wih_{direction}"]; whh = params[f"whh_{direction}"]
        bih = params[f"bih_{direction}"]; bhh = params[f"bhh_{direction}"]
        h = jnp.zeros((B, H), jnp.float32)
        outs = [None] * T
        ts = range(T) if direction == "f" else range(T - 1, -1, -1)
        for t in ts:
            h_new = cell(x[:, t, :], h, wih, whh, bih, bhh)
            valid = (t < lengths)[:, None]
            outs[t] = jnp.where(valid, h_new, 0.0)
            h = jnp.where(valid, h_new, h)
        return jnp.stack(outs, axis=1), h

    out_f, h_f = run("f")
    out_b, h_b = run("b")
    return jnp.concatenate([out_f, out_b], -1), jnp.stack([h_f, h_b], 0)


if __name__ == "__main__":
    key = jax.random.PRNGKey(0)
    vocab_size, embedding_size, hidden_size = 50, 32, 32
    B, T = 8, 8

    k_param, k_ids = jax.random.split(key)
    params = init_params(k_param, vocab_size, embedding_size, hidden_size)
    x_ids = jax.random.randint(k_ids, (B, T), 0, vocab_size, jnp.int32)
    lengths = jnp.array([8, 5, 8, 3, 6, 8, 2, 7], dtype=jnp.int32)

    out, h_n = sentence_encoder_forward(x_ids, lengths, params)
    out = jax.block_until_ready(out)
    h_n = jax.block_until_ready(h_n)

    assert out.shape == (B, T, 2 * hidden_size)
    assert h_n.shape == (2, B, hidden_size)

    out_ref, h_ref = reference_forward(x_ids, lengths, params)
    np.testing.assert_allclose(np.asarray(out), np.asarray(out_ref),
                               atol=1e-4, rtol=1e-4)
    np.testing.assert_allclose(np.asarray(h_n), np.asarray(h_ref),
                               atol=1e-4, rtol=1e-4)

    print("KERNEL_OK")
</pallas_src>

<mosaic_0001>
module attributes {stable_mosaic.version = 11 : i64} {
  func.func @bigru_kernel(%arg0: i32, %arg1: memref<8x8x192xf32, #tpu.memory_space<vmem>>, %arg2: memref<8x8x64xf32, #tpu.memory_space<vmem>>, %arg3: memref<64x192xf32, #tpu.memory_space<vmem>>, %arg4: memref<1x192xf32, #tpu.memory_space<vmem>>, %arg5: memref<8x8x64xf32, #tpu.memory_space<vmem>>, %arg6: memref<2x8x32xf32, #tpu.memory_space<vmem>>) attributes {dimension_semantics = [#tpu.dimension_semantics<parallel>], iteration_bounds = array<i64: 1>, scalar_prefetch = 0 : i64, scratch_operands = 0 : i64, tpu.core_type = #tpu.core_type<tc>, window_params = [{transform_indices = @transform_0, window_bounds = array<i64: 8, 8, 192>}, {transform_indices = @transform_1, window_bounds = array<i64: 8, 8, 64>}, {pipeline_mode = #tpu.pipeline_mode<synchronous>, transform_indices = @transform_2, window_bounds = array<i64: 64, 192>}, {pipeline_mode = #tpu.pipeline_mode<synchronous>, transform_indices = @transform_3, window_bounds = array<i64: 1, 192>}, {transform_indices = @transform_4, window_bounds = array<i64: 8, 8, 64>}, {transform_indices = @transform_5, window_bounds = array<i64: 2, 8, 32>}]} {
    %c0 = arith.constant 0 : index
    %c0_0 = arith.constant 0 : index
    %0 = vector.load %arg3[%c0, %c0_0] : memref<64x192xf32, #tpu.memory_space<vmem>>, vector<64x192xf32>
    %c0_1 = arith.constant 0 : index
    %c0_2 = arith.constant 0 : index
    %1 = vector.load %arg4[%c0_1, %c0_2] : memref<1x192xf32, #tpu.memory_space<vmem>>, vector<1x192xf32>
    %2 = vector.shape_cast %1 : vector<1x192xf32> to vector<1x192xf32>
    %3 = vector.broadcast %2 : vector<1x192xf32> to vector<8x192xf32>
    %cst = arith.constant 0.000000e+00 : f32
    %4 = vector.broadcast %cst : f32 to vector<8x64xf32>
    %c0_i32 = arith.constant 0 : i32
    %5 = arith.index_cast %c0_i32 : i32 to index
    %c0_3 = arith.constant 0 : index
    %c0_4 = arith.constant 0 : index
    %6 = vector.load %arg1[%5, %c0_3, %c0_4] : memref<8x8x192xf32, #tpu.memory_space<vmem>>, vector<1x8x192xf32>
    %7 = vector.shape_cast %6 : vector<1x8x192xf32> to vector<8x192xf32>
    %cst_5 = arith.constant dense<0.000000e+00> : vector<8x192xf32>
    %8 = tpu.matmul %4, %0, %cst_5 {dimension_numbers = #tpu.dot_dimension_numbers<[1], [0], [0], [1], [0, 0, 1, 1], [], []>} : vector<8x64xf32>, vector<64x192xf32>, vector<8x192xf32> -> vector<8x192xf32>
    %9 = arith.addf %8, %3 : vector<8x192xf32>
    %10 = arith.addf %7, %9 : vector<8x192xf32>
    %11 = vector.extract_strided_slice %10 {offsets = [0, 0], sizes = [8, 64], strides = [1, 1]} : vector<8x192xf32> to vector<8x64xf32>
    %12 = arith.negf %11 : vector<8x64xf32>
    %13 = math.exp %12 : vector<8x64xf32>
    %cst_6 = arith.constant 1.000000e+00 : f32
    %14 = vector.broadcast %cst_6 : f32 to vector<8x64xf32>
    %15 = arith.addf %14, %13 : vector<8x64xf32>
    %16 = arith.divf %14, %15 : vector<8x64xf32>
    %17 = vector.extract_strided_slice %10 {offsets = [0, 64], sizes = [8, 64], strides = [1, 1]} : vector<8x192xf32> to vector<8x64xf32>
    %18 = arith.negf %17 : vector<8x64xf32>
    %19 = math.exp %18 : vector<8x64xf32>
    %cst_7 = arith.constant 1.000000e+00 : f32
    %20 = vector.broadcast %cst_7 : f32 to vector<8x64xf32>
    %21 = arith.addf %20, %19 : vector<8x64xf32>
    %22 = arith.divf %20, %21 : vector<8x64xf32>
    %23 = vector.extract_strided_slice %7 {offsets = [0, 128], sizes = [8, 64], strides = [1, 1]} : vector<8x192xf32> to vector<8x64xf32>
    %24 = vector.extract_strided_slice %9 {offsets = [0, 128], sizes = [8, 64], strides = [1, 1]} : vector<8x192xf32> to vector<8x64xf32>
    %25 = arith.mulf %16, %24 : vector<8x64xf32>
    %26 = arith.addf %23, %25 : vector<8x64xf32>
    %27 = math.tanh %26 : vector<8x64xf32>
    %cst_8 = arith.constant 1.000000e+00 : f32
    %28 = vector.broadcast %cst_8 : f32 to vector<8x64xf32>
    %29 = arith.subf %28, %22 : vector<8x64xf32>
    %30 = arith.mulf %29, %27 : vector<8x64xf32>
    %31 = arith.mulf %22, %4 : vector<8x64xf32>
    %32 = arith.addf %30, %31 : vector<8x64xf32>
    %33 = arith.index_cast %c0_i32 : i32 to index
    %c0_9 = arith.constant 0 : index
    %c0_10 = arith.constant 0 : index
    %34 = vector.load %arg2[%33, %c0_9, %c0_10] : memref<8x8x64xf32, #tpu.memory_space<vmem>>, vector<1x8x64xf32>
    %35 = vector.shape_cast %34 : vector<1x8x64xf32> to vector<8x64xf32>
    %36 = arith.mulf %35, %32 : vector<8x64xf32>
    %37 = vector.extract_strided_slice %36 {offsets = [0, 0], sizes = [8, 32], strides = [1, 1]} : vector<8x64xf32> to vector<8x32xf32>
    %38 = arith.index_cast %c0_i32 : i32 to index
    %c0_11 = arith.constant 0 : index
    %c0_12 = arith.constant 0 : index
    %39 = vector.load %arg5[%38, %c0_11, %c0_12] : memref<8x8x64xf32, #tpu.memory_space<vmem>>, vector<1x8x32xf32>
    %40 = vector.shape_cast %39 : vector<1x8x32xf32> to vector<8x32xf32>
    %41 = vector.shape_cast %37 : vector<8x32xf32> to vector<1x8x32xf32>
    tpu.vector_store %arg5[%38, %c0_11, %c0_12], %41 {strides = array<i32>} : memref<8x8x64xf32, #tpu.memory_space<vmem>>, vector<1x8x32xf32>,
    %42 = vector.extract_strided_slice %36 {offsets = [0, 32], sizes = [8, 32], strides = [1, 1]} : vector<8x64xf32> to vector<8x32xf32>
    %c7_i32 = arith.constant 7 : i32
    %43 = arith.subi %c7_i32, %c0_i32 : i32
    %44 = arith.index_cast %43 : i32 to index
    %c0_13 = arith.constant 0 : index
    %c32 = arith.constant 32 : index
    %45 = vector.load %arg5[%44, %c0_13, %c32] : memref<8x8x64xf32, #tpu.memory_space<vmem>>, vector<1x8x32xf32>
    %46 = vector.shape_cast %45 : vector<1x8x32xf32> to vector<8x32xf32>
    %47 = vector.shape_cast %42 : vector<8x32xf32> to vector<1x8x32xf32>
    tpu.vector_store %arg5[%44, %c0_13, %c32], %47 {strides = array<i32>} : memref<8x8x64xf32, #tpu.memory_space<vmem>>, vector<1x8x32xf32>,
    %48 = arith.subf %32, %4 : vector<8x64xf32>
    %49 = arith.mulf %35, %48 : vector<8x64xf32>
    %50 = arith.addf %4, %49 : vector<8x64xf32>
    %c1_i32 = arith.constant 1 : i32
    %51 = arith.index_cast %c1_i32 : i32 to index
    %c0_14 = arith.constant 0 : index
    %c0_15 = arith.constant 0 : index
    %52 = vector.load %arg1[%51, %c0_14, %c0_15] : memref<8x8x192xf32, #tpu.memory_space<vmem>>, vector<1x8x192xf32>
    %53 = vector.shape_cast %52 : vector<1x8x192xf32> to vector<8x192xf32>
    %cst_16 = arith.constant dense<0.000000e+00> : vector<8x192xf32>
    %54 = tpu.matmul %50, %0, %cst_16 {dimension_numbers = #tpu.dot_dimension_numbers<[1], [0], [0], [1], [0, 0, 1, 1], [], []>} : vector<8x64xf32>, vector<64x192xf32>, vector<8x192xf32> -> vector<8x192xf32>
    %55 = arith.addf %54, %3 : vector<8x192xf32>
    %56 = arith.addf %53, %55 : vector<8x192xf32>
    %57 = vector.extract_strided_slice %56 {offsets = [0, 0], sizes = [8, 64], strides = [1, 1]} : vector<8x192xf32> to vector<8x64xf32>
    %58 = arith.negf %57 : vector<8x64xf32>
    %59 = math.exp %58 : vector<8x64xf32>
    %cst_17 = arith.constant 1.000000e+00 : f32
    %60 = vector.broadcast %cst_17 : f32 to vector<8x64xf32>
    %61 = arith.addf %60, %59 : vector<8x64xf32>
    %62 = arith.divf %60, %61 : vector<8x64xf32>
    %63 = vector.extract_strided_slice %56 {offsets = [0, 64], sizes = [8, 64], strides = [1, 1]} : vector<8x192xf32> to vector<8x64xf32>
    %64 = arith.negf %63 : vector<8x64xf32>
    %65 = math.exp %64 : vector<8x64xf32>
    %cst_18 = arith.constant 1.000000e+00 : f32
    %66 = vector.broadcast %cst_18 : f32 to vector<8x64xf32>
    %67 = arith.addf %66, %65 : vector<8x64xf32>
    %68 = arith.divf %66, %67 : vector<8x64xf32>
    %69 = vector.extract_strided_slice %53 {offsets = [0, 128], sizes = [8, 64], strides = [1, 1]} : vector<8x192xf32> to vector<8x64xf32>
    %70 = vector.extract_strided_slice %55 {offsets = [0, 128], sizes = [8, 64], strides = [1, 1]} : vector<8x192xf32> to vector<8x64xf32>
    %71 = arith.mulf %62, %70 : vector<8x64xf32>
    %72 = arith.addf %69, %71 : vector<8x64xf32>
    %73 = math.tanh %72 : vector<8x64xf32>
    %cst_19 = arith.constant 1.000000e+00 : f32
    %74 = vector.broadcast %cst_19 : f32 to vector<8x64xf32>
    %75 = arith.subf %74, %68 : vector<8x64xf32>
    %76 = arith.mulf %75, %73 : vector<8x64xf32>
    %77 = arith.mulf %68, %50 : vector<8x64xf32>
    %78 = arith.addf %76, %77 : vector<8x64xf32>
    %79 = arith.index_cast %c1_i32 : i32 to index
    %c0_20 = arith.constant 0 : index
    %c0_21 = arith.constant 0 : index
    %80 = vector.load %arg2[%79, %c0_20, %c0_21] : memref<8x8x64xf32, #tpu.memory_space<vmem>>, vector<1x8x64xf32>
    %81 = vector.shape_cast %80 : vector<1x8x64xf32> to vector<8x64xf32>
    %82 = arith.mulf %81, %78 : vector<8x64xf32>
    %83 = vector.extract_strided_slice %82 {offsets = [0, 0], sizes = [8, 32], strides = [1, 1]} : vector<8x64xf32> to vector<8x32xf32>
    %84 = arith.index_cast %c1_i32 : i32 to index
    %c0_22 = arith.constant 0 : index
    %c0_23 = arith.constant 0 : index
    %85 = vector.load %arg5[%84, %c0_22, %c0_23] : memref<8x8x64xf32, #tpu.memory_space<vmem>>, vector<1x8x32xf32>
    %86 = vector.shape_cast %85 : vector<1x8x32xf32> to vector<8x32xf32>
    %87 = vector.shape_cast %83 : vector<8x32xf32> to vector<1x8x32xf32>
    tpu.vector_store %arg5[%84, %c0_22, %c0_23], %87 {strides = array<i32>} : memref<8x8x64xf32, #tpu.memory_space<vmem>>, vector<1x8x32xf32>,
    %88 = vector.extract_strided_slice %82 {offsets = [0, 32], sizes = [8, 32], strides = [1, 1]} : vector<8x64xf32> to vector<8x32xf32>
    %c7_i32_24 = arith.constant 7 : i32
    %89 = arith.subi %c7_i32_24, %c1_i32 : i32
    %90 = arith.index_cast %89 : i32 to index
    %c0_25 = arith.constant 0 : index
    %c32_26 = arith.constant 32 : index
    %91 = vector.load %arg5[%90, %c0_25, %c32_26] : memref<8x8x64xf32, #tpu.memory_space<vmem>>, vector<1x8x32xf32>
    %92 = vector.shape_cast %91 : vector<1x8x32xf32> to vector<8x32xf32>
    %93 = vector.shape_cast %88 : vector<8x32xf32> to vector<1x8x32xf32>
    tpu.vector_store %arg5[%90, %c0_25, %c32_26], %93 {strides = array<i32>} : memref<8x8x64xf32, #tpu.memory_space<vmem>>, vector<1x8x32xf32>,
    %94 = arith.subf %78, %50 : vector<8x64xf32>
    %95 = arith.mulf %81, %94 : vector<8x64xf32>
    %96 = arith.addf %50, %95 : vector<8x64xf32>
    %c2_i32 = arith.constant 2 : i32
    %97 = arith.index_cast %c2_i32 : i32 to index
    %c0_27 = arith.constant 0 : index
    %c0_28 = arith.constant 0 : index
    %98 = vector.load %arg1[%97, %c0_27, %c0_28] : memref<8x8x192xf32, #tpu.memory_space<vmem>>, vector<1x8x192xf32>
    %99 = vector.shape_cast %98 : vector<1x8x192xf32> to vector<8x192xf32>
    %cst_29 = arith.constant dense<0.000000e+00> : vector<8x192xf32>
    %100 = tpu.matmul %96, %0, %cst_29 {dimension_numbers = #tpu.dot_dimension_numbers<[1], [0], [0], [1], [0, 0, 1, 1], [], []>} : vector<8x64xf32>, vector<64x192xf32>, vector<8x192xf32> -> vector<8x192xf32>
    %101 = arith.addf %100, %3 : vector<8x192xf32>
    %102 = arith.addf %99, %101 : vector<8x192xf32>
    %103 = vector.extract_strided_slice %102 {offsets = [0, 0], sizes = [8, 64], strides = [1, 1]} : vector<8x192xf32> to vector<8x64xf32>
    %104 = arith.negf %103 : vector<8x64xf32>
    %105 = math.exp %104 : vector<8x64xf32>
    %cst_30 = arith.constant 1.000000e+00 : f32
    %106 = vector.broadcast %cst_30 : f32 to vector<8x64xf32>
    %107 = arith.addf %106, %105 : vector<8x64xf32>
    %108 = arith.divf %106, %107 : vector<8x64xf32>
    %109 = vector.extract_strided_slice %102 {offsets = [0, 64], sizes = [8, 64], strides = [1, 1]} : vector<8x192xf32> to vector<8x64xf32>
    %110 = arith.negf %109 : vector<8x64xf32>
    %111 = math.exp %110 : vector<8x64xf32>
    %cst_31 = arith.constant 1.000000e+00 : f32
    %112 = vector.broadcast %cst_31 : f32 to vector<8x64xf32>
    %113 = arith.addf %112, %111 : vector<8x64xf32>
    %114 = arith.divf %112, %113 : vector<8x64xf32>
    %115 = vector.extract_strided_slice %99 {offsets = [0, 128], sizes = [8, 64], strides = [1, 1]} : vector<8x192xf32> to vector<8x64xf32>
    %116 = vector.extract_strided_slice %101 {offsets = [0, 128], sizes = [8, 64], strides = [1, 1]} : vector<8x192xf32> to vector<8x64xf32>
    %117 = arith.mulf %108, %116 : vector<8x64xf32>
    %118 = arith.addf %115, %117 : vector<8x64xf32>
    %119 = math.tanh %118 : vector<8x64xf32>
    %cst_32 = arith.constant 1.000000e+00 : f32
    %120 = vector.broadcast %cst_32 : f32 to vector<8x64xf32>
    %121 = arith.subf %120, %114 : vector<8x64xf32>
    %122 = arith.mulf %121, %119 : vector<8x64xf32>
    %123 = arith.mulf %114, %96 : vector<8x64xf32>
    %124 = arith.addf %122, %123 : vector<8x64xf32>
    %125 = arith.index_cast %c2_i32 : i32 to index
    %c0_33 = arith.constant 0 : index
    %c0_34 = arith.constant 0 : index
    %126 = vector.load %arg2[%125, %c0_33, %c0_34] : memref<8x8x64xf32, #tpu.memory_space<vmem>>, vector<1x8x64xf32>
    %127 = vector.shape_cast %126 : vector<1x8x64xf32> to vector<8x64xf32>
    %128 = arith.mulf %127, %124 : vector<8x64xf32>
    %129 = vector.extract_strided_slice %128 {offsets = [0, 0], sizes = [8, 32], strides = [1, 1]} : vector<8x64xf32> to vector<8x32xf32>
    %130 = arith.index_cast %c2_i32 : i32 to index
    %c0_35 = arith.constant 0 : index
    %c0_36 = arith.constant 0 : index
    %131 = vector.load %arg5[%130, %c0_35, %c0_36] : memref<8x8x64xf32, #tpu.memory_space<vmem>>, vector<1x8x32xf32>
    %132 = vector.shape_cast %131 : vector<1x8x32xf32> to vector<8x32xf32>
    %133 = vector.shape_cast %129 : vector<8x32xf32> to vector<1x8x32xf32>
    tpu.vector_store %arg5[%130, %c0_35, %c0_36], %133 {strides = array<i32>} : memref<8x8x64xf32, #tpu.memory_space<vmem>>, vector<1x8x32xf32>,
    %134 = vector.extract_strided_slice %128 {offsets = [0, 32], sizes = [8, 32], strides = [1, 1]} : vector<8x64xf32> to vector<8x32xf32>
    %c7_i32_37 = arith.constant 7 : i32
    %135 = arith.subi %c7_i32_37, %c2_i32 : i32
    %136 = arith.index_cast %135 : i32 to index
    %c0_38 = arith.constant 0 : index
    %c32_39 = arith.constant 32 : index
    %137 = vector.load %arg5[%136, %c0_38, %c32_39] : memref<8x8x64xf32, #tpu.memory_space<vmem>>, vector<1x8x32xf32>
    %138 = vector.shape_cast %137 : vector<1x8x32xf32> to vector<8x32xf32>
    %139 = vector.shape_cast %134 : vector<8x32xf32> to vector<1x8x32xf32>
    tpu.vector_store %arg5[%136, %c0_38, %c32_39], %139 {strides = array<i32>} : memref<8x8x64xf32, #tpu.memory_space<vmem>>, vector<1x8x32xf32>,
    %140 = arith.subf %124, %96 : vector<8x64xf32>
    %141 = arith.mulf %127, %140 : vector<8x64xf32>
    %142 = arith.addf %96, %141 : vector<8x64xf32>
    %c3_i32 = arith.constant 3 : i32
    %143 = arith.index_cast %c3_i32 : i32 to index
    %c0_40 = arith.constant 0 : index
    %c0_41 = arith.constant 0 : index
    %144 = vector.load %arg1[%143, %c0_40, %c0_41] : memref<8x8x192xf32, #tpu.memory_space<vmem>>, vector<1x8x192xf32>
    %145 = vector.shape_cast %144 : vector<1x8x192xf32> to vector<8x192xf32>
    %cst_42 = arith.constant dense<0.000000e+00> : vector<8x192xf32>
    %146 = tpu.matmul %142, %0, %cst_42 {dimension_numbers = #tpu.dot_dimension_numbers<[1], [0], [0], [1], [0, 0, 1, 1], [], []>} : vector<8x64xf32>, vector<64x192xf32>, vector<8x192xf32> -> vector<8x192xf32>
    %147 = arith.addf %146, %3 : vector<8x192xf32>
    %148 = arith.addf %145, %147 : vector<8x192xf32>
    %149 = vector.extract_strided_slice %148 {offsets = [0, 0], sizes = [8, 64], strides = [1, 1]} : vector<8x192xf32> to vector<8x64xf32>
    %150 = arith.negf %149 : vector<8x64xf32>
    %151 = math.exp %150 : vector<8x64xf32>
    %cst_43 = arith.constant 1.000000e+00 : f32
    %152 = vector.broadcast %cst_43 : f32 to vector<8x64xf32>
    %153 = arith.addf %152, %151 : vector<8x64xf32>
    %154 = arith.divf %152, %153 : vector<8x64xf32>
    %155 = vector.extract_strided_slice %148 {offsets = [0, 64], sizes = [8, 64], strides = [1, 1]} : vector<8x192xf32> to vector<8x64xf32>
    %156 = arith.negf %155 : vector<8x64xf32>
    %157 = math.exp %156 : vector<8x64xf32>
    %cst_44 = arith.constant 1.000000e+00 : f32
    %158 = vector.broadcast %cst_44 : f32 to vector<8x64xf32>
    %159 = arith.addf %158, %157 : vector<8x64xf32>
    %160 = arith.divf %158, %159 : vector<8x64xf32>
    %161 = vector.extract_strided_slice %145 {offsets = [0, 128], sizes = [8, 64], strides = [1, 1]} : vector<8x192xf32> to vector<8x64xf32>
    %162 = vector.extract_strided_slice %147 {offsets = [0, 128], sizes = [8, 64], strides = [1, 1]} : vector<8x192xf32> to vector<8x64xf32>
    %163 = arith.mulf %154, %162 : vector<8x64xf32>
    %164 = arith.addf %161, %163 : vector<8x64xf32>
    %165 = math.tanh %164 : vector<8x64xf32>
    %cst_45 = arith.constant 1.000000e+00 : f32
    %166 = vector.broadcast %cst_45 : f32 to vector<8x64xf32>
    %167 = arith.subf %166, %160 : vector<8x64xf32>
    %168 = arith.mulf %167, %165 : vector<8x64xf32>
    %169 = arith.mulf %160, %142 : vector<8x64xf32>
    %170 = arith.addf %168, %169 : vector<8x64xf32>
    %171 = arith.index_cast %c3_i32 : i32 to index
    %c0_46 = arith.constant 0 : index
    %c0_47 = arith.constant 0 : index
    %172 = vector.load %arg2[%171, %c0_46, %c0_47] : memref<8x8x64xf32, #tpu.memory_space<vmem>>, vector<1x8x64xf32>
    %173 = vector.shape_cast %172 : vector<1x8x64xf32> to vector<8x64xf32>
    %174 = arith.mulf %173, %170 : vector<8x64xf32>
    %175 = vector.extract_strided_slice %174 {offsets = [0, 0], sizes = [8, 32], strides = [1, 1]} : vector<8x64xf32> to vector<8x32xf32>
    %176 = arith.index_cast %c3_i32 : i32 to index
    %c0_48 = arith.constant 0 : index
    %c0_49 = arith.constant 0 : index
    %177 = vector.load %arg5[%176, %c0_48, %c0_49] : memref<8x8x64xf32, #tpu.memory_space<vmem>>, vector<1x8x32xf32>
    %178 = vector.shape_cast %177 : vector<1x8x32xf32> to vector<8x32xf32>
    %179 = vector.shape_cast %175 : vector<8x32xf32> to vector<1x8x32xf32>
    tpu.vector_store %arg5[%176, %c0_48, %c0_49], %179 {strides = array<i32>} : memref<8x8x64xf32, #tpu.memory_space<vmem>>, vector<1x8x32xf32>,
    %180 = vector.extract_strided_slice %174 {offsets = [0, 32], sizes = [8, 32], strides = [1, 1]} : vector<8x64xf32> to vector<8x32xf32>
    %c7_i32_50 = arith.constant 7 : i32
    %181 = arith.subi %c7_i32_50, %c3_i32 : i32
    %182 = arith.index_cast %181 : i32 to index
    %c0_51 = arith.constant 0 : index
    %c32_52 = arith.constant 32 : index
    %183 = vector.load %arg5[%182, %c0_51, %c32_52] : memref<8x8x64xf32, #tpu.memory_space<vmem>>, vector<1x8x32xf32>
    %184 = vector.shape_cast %183 : vector<1x8x32xf32> to vector<8x32xf32>
    %185 = vector.shape_cast %180 : vector<8x32xf32> to vector<1x8x32xf32>
    tpu.vector_store %arg5[%182, %c0_51, %c32_52], %185 {strides = array<i32>} : memref<8x8x64xf32, #tpu.memory_space<vmem>>, vector<1x8x32xf32>,
    %186 = arith.subf %170, %142 : vector<8x64xf32>
    %187 = arith.mulf %173, %186 : vector<8x64xf32>
    %188 = arith.addf %142, %187 : vector<8x64xf32>
    %c4_i32 = arith.constant 4 : i32
    %189 = arith.index_cast %c4_i32 : i32 to index
    %c0_53 = arith.constant 0 : index
    %c0_54 = arith.constant 0 : index
    %190 = vector.load %arg1[%189, %c0_53, %c0_54] : memref<8x8x192xf32, #tpu.memory_space<vmem>>, vector<1x8x192xf32>
    %191 = vector.shape_cast %190 : vector<1x8x192xf32> to vector<8x192xf32>
    %cst_55 = arith.constant dense<0.000000e+00> : vector<8x192xf32>
    %192 = tpu.matmul %188, %0, %cst_55 {dimension_numbers = #tpu.dot_dimension_numbers<[1], [0], [0], [1], [0, 0, 1, 1], [], []>} : vector<8x64xf32>, vector<64x192xf32>, vector<8x192xf32> -> vector<8x192xf32>
    %193 = arith.addf %192, %3 : vector<8x192xf32>
    %194 = arith.addf %191, %193 : vector<8x192xf32>
    %195 = vector.extract_strided_slice %194 {offsets = [0, 0], sizes = [8, 64], strides = [1, 1]} : vector<8x192xf32> to vector<8x64xf32>
    %196 = arith.negf %195 : vector<8x64xf32>
    %197 = math.exp %196 : vector<8x64xf32>
    %cst_56 = arith.constant 1.000000e+00 : f32
    %198 = vector.broadcast %cst_56 : f32 to vector<8x64xf32>
    %199 = arith.addf %198, %197 : vector<8x64xf32>
    %200 = arith.divf %198, %199 : vector<8x64xf32>
    %201 = vector.extract_strided_slice %194 {offsets = [0, 64], sizes = [8, 64], strides = [1, 1]} : vector<8x192xf32> to vector<8x64xf32>
    %202 = arith.negf %201 : vector<8x64xf32>
    %203 = math.exp %202 : vector<8x64xf32>
    %cst_57 = arith.constant 1.000000e+00 : f32
    %204 = vector.broadcast %cst_57 : f32 to vector<8x64xf32>
    %205 = arith.addf %204, %203 : vector<8x64xf32>
    %206 = arith.divf %204, %205 : vector<8x64xf32>
    %207 = vector.extract_strided_slice %191 {offsets = [0, 128], sizes = [8, 64], strides = [1, 1]} : vector<8x192xf32> to vector<8x64xf32>
    %208 = vector.extract_strided_slice %193 {offsets = [0, 128], sizes = [8, 64], strides = [1, 1]} : vector<8x192xf32> to vector<8x64xf32>
    %209 = arith.mulf %200, %208 : vector<8x64xf32>
    %210 = arith.addf %207, %209 : vector<8x64xf32>
    %211 = math.tanh %210 : vector<8x64xf32>
    %cst_58 = arith.constant 1.000000e+00 : f32
    %212 = vector.broadcast %cst_58 : f32 to vector<8x64xf32>
    %213 = arith.subf %212, %206 : vector<8x64xf32>
    %214 = arith.mulf %213, %211 : vector<8x64xf32>
    %215 = arith.mulf %206, %188 : vector<8x64xf32>
    %216 = arith.addf %214, %215 : vector<8x64xf32>
    %217 = arith.index_cast %c4_i32 : i32 to index
    %c0_59 = arith.constant 0 : index
    %c0_60 = arith.constant 0 : index
    %218 = vector.load %arg2[%217, %c0_59, %c0_60] : memref<8x8x64xf32, #tpu.memory_space<vmem>>, vector<1x8x64xf32>
    %219 = vector.shape_cast %218 : vector<1x8x64xf32> to vector<8x64xf32>
    %220 = arith.mulf %219, %216 : vector<8x64xf32>
    %221 = vector.extract_strided_slice %220 {offsets = [0, 0], sizes = [8, 32], strides = [1, 1]} : vector<8x64xf32> to vector<8x32xf32>
    %222 = arith.index_cast %c4_i32 : i32 to index
    %c0_61 = arith.constant 0 : index
    %c0_62 = arith.constant 0 : index
    %223 = vector.load %arg5[%222, %c0_61, %c0_62] : memref<8x8x64xf32, #tpu.memory_space<vmem>>, vector<1x8x32xf32>
    %224 = vector.shape_cast %223 : vector<1x8x32xf32> to vector<8x32xf32>
    %225 = vector.shape_cast %221 : vector<8x32xf32> to vector<1x8x32xf32>
    tpu.vector_store %arg5[%222, %c0_61, %c0_62], %225 {strides = array<i32>} : memref<8x8x64xf32, #tpu.memory_space<vmem>>, vector<1x8x32xf32>,
    %226 = vector.extract_strided_slice %220 {offsets = [0, 32], sizes = [8, 32], strides = [1, 1]} : vector<8x64xf32> to vector<8x32xf32>
    %c7_i32_63 = arith.constant 7 : i32
    %227 = arith.subi %c7_i32_63, %c4_i32 : i32
    %228 = arith.index_cast %227 : i32 to index
    %c0_64 = arith.constant 0 : index
    %c32_65 = arith.constant 32 : index
    %229 = vector.load %arg5[%228, %c0_64, %c32_65] : memref<8x8x64xf32, #tpu.memory_space<vmem>>, vector<1x8x32xf32>
    %230 = vector.shape_cast %229 : vector<1x8x32xf32> to vector<8x32xf32>
    %231 = vector.shape_cast %226 : vector<8x32xf32> to vector<1x8x32xf32>
    tpu.vector_store %arg5[%228, %c0_64, %c32_65], %231 {strides = array<i32>} : memref<8x8x64xf32, #tpu.memory_space<vmem>>, vector<1x8x32xf32>,
    %232 = arith.subf %216, %188 : vector<8x64xf32>
    %233 = arith.mulf %219, %232 : vector<8x64xf32>
    %234 = arith.addf %188, %233 : vector<8x64xf32>
    %c5_i32 = arith.constant 5 : i32
    %235 = arith.index_cast %c5_i32 : i32 to index
    %c0_66 = arith.constant 0 : index
    %c0_67 = arith.constant 0 : index
    %236 = vector.load %arg1[%235, %c0_66, %c0_67] : memref<8x8x192xf32, #tpu.memory_space<vmem>>, vector<1x8x192xf32>
    %237 = vector.shape_cast %236 : vector<1x8x192xf32> to vector<8x192xf32>
    %cst_68 = arith.constant dense<0.000000e+00> : vector<8x192xf32>
    %238 = tpu.matmul %234, %0, %cst_68 {dimension_numbers = #tpu.dot_dimension_numbers<[1], [0], [0], [1], [0, 0, 1, 1], [], []>} : vector<8x64xf32>, vector<64x192xf32>, vector<8x192xf32> -> vector<8x192xf32>
    %239 = arith.addf %238, %3 : vector<8x192xf32>
    %240 = arith.addf %237, %239 : vector<8x192xf32>
    %241 = vector.extract_strided_slice %240 {offsets = [0, 0], sizes = [8, 64], strides = [1, 1]} : vector<8x192xf32> to vector<8x64xf32>
    %242 = arith.negf %241 : vector<8x64xf32>
    %243 = math.exp %242 : vector<8x64xf32>
    %cst_69 = arith.constant 1.000000e+00 : f32
    %244 = vector.broadcast %cst_69 : f32 to vector<8x64xf32>
    %245 = arith.addf %244, %243 : vector<8x64xf32>
    %246 = arith.divf %244, %245 : vector<8x64xf32>
    %247 = vector.extract_strided_slice %240 {offsets = [0, 64], sizes = [8, 64], strides = [1, 1]} : vector<8x192xf32> to vector<8x64xf32>
    %248 = arith.negf %247 : vector<8x64xf32>
    %249 = math.exp %248 : vector<8x64xf32>
    %cst_70 = arith.constant 1.000000e+00 : f32
    %250 = vector.broadcast %cst_70 : f32 to vector<8x64xf32>
    %251 = arith.addf %250, %249 : vector<8x64xf32>
    %252 = arith.divf %250, %251 : vector<8x64xf32>
    %253 = vector.extract_strided_slice %237 {offsets = [0, 128], sizes = [8, 64], strides = [1, 1]} : vector<8x192xf32> to vector<8x64xf32>
    %254 = vector.extract_strided_slice %239 {offsets = [0, 128], sizes = [8, 64], strides = [1, 1]} : vector<8x192xf32> to vector<8x64xf32>
    %255 = arith.mulf %246, %254 : vector<8x64xf32>
    %256 = arith.addf %253, %255 : vector<8x64xf32>
    %257 = math.tanh %256 : vector<8x64xf32>
    %cst_71 = arith.constant 1.000000e+00 : f32
    %258 = vector.broadcast %cst_71 : f32 to vector<8x64xf32>
    %259 = arith.subf %258, %252 : vector<8x64xf32>
    %260 = arith.mulf %259, %257 : vector<8x64xf32>
    %261 = arith.mulf %252, %234 : vector<8x64xf32>
    %262 = arith.addf %260, %261 : vector<8x64xf32>
    %263 = arith.index_cast %c5_i32 : i32 to index
    %c0_72 = arith.constant 0 : index
    %c0_73 = arith.constant 0 : index
    %264 = vector.load %arg2[%263, %c0_72, %c0_73] : memref<8x8x64xf32, #tpu.memory_space<vmem>>, vector<1x8x64xf32>
    %265 = vector.shape_cast %264 : vector<1x8x64xf32> to vector<8x64xf32>
    %266 = arith.mulf %265, %262 : vector<8x64xf32>
    %267 = vector.extract_strided_slice %266 {offsets = [0, 0], sizes = [8, 32], strides = [1, 1]} : vector<8x64xf32> to vector<8x32xf32>
    %268 = arith.index_cast %c5_i32 : i32 to index
    %c0_74 = arith.constant 0 : index
    %c0_75 = arith.constant 0 : index
    %269 = vector.load %arg5[%268, %c0_74, %c0_75] : memref<8x8x64xf32, #tpu.memory_space<vmem>>, vector<1x8x32xf32>
    %270 = vector.shape_cast %269 : vector<1x8x32xf32> to vector<8x32xf32>
    %271 = vector.shape_cast %267 : vector<8x32xf32> to vector<1x8x32xf32>
    tpu.vector_store %arg5[%268, %c0_74, %c0_75], %271 {strides = array<i32>} : memref<8x8x64xf32, #tpu.memory_space<vmem>>, vector<1x8x32xf32>,
    %272 = vector.extract_strided_slice %266 {offsets = [0, 32], sizes = [8, 32], strides = [1, 1]} : vector<8x64xf32> to vector<8x32xf32>
    %c7_i32_76 = arith.constant 7 : i32
    %273 = arith.subi %c7_i32_76, %c5_i32 : i32
    %274 = arith.index_cast %273 : i32 to index
    %c0_77 = arith.constant 0 : index
    %c32_78 = arith.constant 32 : index
    %275 = vector.load %arg5[%274, %c0_77, %c32_78] : memref<8x8x64xf32, #tpu.memory_space<vmem>>, vector<1x8x32xf32>
    %276 = vector.shape_cast %275 : vector<1x8x32xf32> to vector<8x32xf32>
    %277 = vector.shape_cast %272 : vector<8x32xf32> to vector<1x8x32xf32>
    tpu.vector_store %arg5[%274, %c0_77, %c32_78], %277 {strides = array<i32>} : memref<8x8x64xf32, #tpu.memory_space<vmem>>, vector<1x8x32xf32>,
    %278 = arith.subf %262, %234 : vector<8x64xf32>
    %279 = arith.mulf %265, %278 : vector<8x64xf32>
    %280 = arith.addf %234, %279 : vector<8x64xf32>
    %c6_i32 = arith.constant 6 : i32
    %281 = arith.index_cast %c6_i32 : i32 to index
    %c0_79 = arith.constant 0 : index
    %c0_80 = arith.constant 0 : index
    %282 = vector.load %arg1[%281, %c0_79, %c0_80] : memref<8x8x192xf32, #tpu.memory_space<vmem>>, vector<1x8x192xf32>
    %283 = vector.shape_cast %282 : vector<1x8x192xf32> to vector<8x192xf32>
    %cst_81 = arith.constant dense<0.000000e+00> : vector<8x192xf32>
    %284 = tpu.matmul %280, %0, %cst_81 {dimension_numbers = #tpu.dot_dimension_numbers<[1], [0], [0], [1], [0, 0, 1, 1], [], []>} : vector<8x64xf32>, vector<64x192xf32>, vector<8x192xf32> -> vector<8x192xf32>
    %285 = arith.addf %284, %3 : vector<8x192xf32>
    %286 = arith.addf %283, %285 : vector<8x192xf32>
    %287 = vector.extract_strided_slice %286 {offsets = [0, 0], sizes = [8, 64], strides = [1, 1]} : vector<8x192xf32> to vector<8x64xf32>
    %288 = arith.negf %287 : vector<8x64xf32>
    %289 = math.exp %288 : vector<8x64xf32>
    %cst_82 = arith.constant 1.000000e+00 : f32
    %290 = vector.broadcast %cst_82 : f32 to vector<8x64xf32>
    %291 = arith.addf %290, %289 : vector<8x64xf32>
    %292 = arith.divf %290, %291 : vector<8x64xf32>
    %293 = vector.extract_strided_slice %286 {offsets = [0, 64], sizes = [8, 64], strides = [1, 1]} : vector<8x192xf32> to vector<8x64xf32>
    %294 = arith.negf %293 : vector<8x64xf32>
    %295 = math.exp %294 : vector<8x64xf32>
    %cst_83 = arith.constant 1.000000e+00 : f32
    %296 = vector.broadcast %cst_83 : f32 to vector<8x64xf32>
    %297 = arith.addf %296, %295 : vector<8x64xf32>
    %298 = arith.divf %296, %297 : vector<8x64xf32>
    %299 = vector.extract_strided_slice %283 {offsets = [0, 128], sizes = [8, 64], strides = [1, 1]} : vector<8x192xf32> to vector<8x64xf32>
    %300 = vector.extract_strided_slice %285 {offsets = [0, 128], sizes = [8, 64], strides = [1, 1]} : vector<8x192xf32> to vector<8x64xf32>
    %301 = arith.mulf %292, %300 : vector<8x64xf32>
    %302 = arith.addf %299, %301 : vector<8x64xf32>
    %303 = math.tanh %302 : vector<8x64xf32>
    %cst_84 = arith.constant 1.000000e+00 : f32
    %304 = vector.broadcast %cst_84 : f32 to vector<8x64xf32>
    %305 = arith.subf %304, %298 : vector<8x64xf32>
    %306 = arith.mulf %305, %303 : vector<8x64xf32>
    %307 = arith.mulf %298, %280 : vector<8x64xf32>
    %308 = arith.addf %306, %307 : vector<8x64xf32>
    %309 = arith.index_cast %c6_i32 : i32 to index
    %c0_85 = arith.constant 0 : index
    %c0_86 = arith.constant 0 : index
    %310 = vector.load %arg2[%309, %c0_85, %c0_86] : memref<8x8x64xf32, #tpu.memory_space<vmem>>, vector<1x8x64xf32>
    %311 = vector.shape_cast %310 : vector<1x8x64xf32> to vector<8x64xf32>
    %312 = arith.mulf %311, %308 : vector<8x64xf32>
    %313 = vector.extract_strided_slice %312 {offsets = [0, 0], sizes = [8, 32], strides = [1, 1]} : vector<8x64xf32> to vector<8x32xf32>
    %314 = arith.index_cast %c6_i32 : i32 to index
    %c0_87 = arith.constant 0 : index
    %c0_88 = arith.constant 0 : index
    %315 = vector.load %arg5[%314, %c0_87, %c0_88] : memref<8x8x64xf32, #tpu.memory_space<vmem>>, vector<1x8x32xf32>
    %316 = vector.shape_cast %315 : vector<1x8x32xf32> to vector<8x32xf32>
    %317 = vector.shape_cast %313 : vector<8x32xf32> to vector<1x8x32xf32>
    tpu.vector_store %arg5[%314, %c0_87, %c0_88], %317 {strides = array<i32>} : memref<8x8x64xf32, #tpu.memory_space<vmem>>, vector<1x8x32xf32>,
    %318 = vector.extract_strided_slice %312 {offsets = [0, 32], sizes = [8, 32], strides = [1, 1]} : vector<8x64xf32> to vector<8x32xf32>
    %c7_i32_89 = arith.constant 7 : i32
    %319 = arith.subi %c7_i32_89, %c6_i32 : i32
    %320 = arith.index_cast %319 : i32 to index
    %c0_90 = arith.constant 0 : index
    %c32_91 = arith.constant 32 : index
    %321 = vector.load %arg5[%320, %c0_90, %c32_91] : memref<8x8x64xf32, #tpu.memory_space<vmem>>, vector<1x8x32xf32>
    %322 = vector.shape_cast %321 : vector<1x8x32xf32> to vector<8x32xf32>
    %323 = vector.shape_cast %318 : vector<8x32xf32> to vector<1x8x32xf32>
    tpu.vector_store %arg5[%320, %c0_90, %c32_91], %323 {strides = array<i32>} : memref<8x8x64xf32, #tpu.memory_space<vmem>>, vector<1x8x32xf32>,
    %324 = arith.subf %308, %280 : vector<8x64xf32>
    %325 = arith.mulf %311, %324 : vector<8x64xf32>
    %326 = arith.addf %280, %325 : vector<8x64xf32>
    %c7_i32_92 = arith.constant 7 : i32
    %327 = arith.index_cast %c7_i32_92 : i32 to index
    %c0_93 = arith.constant 0 : index
    %c0_94 = arith.constant 0 : index
    %328 = vector.load %arg1[%327, %c0_93, %c0_94] : memref<8x8x192xf32, #tpu.memory_space<vmem>>, vector<1x8x192xf32>
    %329 = vector.shape_cast %328 : vector<1x8x192xf32> to vector<8x192xf32>
    %cst_95 = arith.constant dense<0.000000e+00> : vector<8x192xf32>
    %330 = tpu.matmul %326, %0, %cst_95 {dimension_numbers = #tpu.dot_dimension_numbers<[1], [0], [0], [1], [0, 0, 1, 1], [], []>} : vector<8x64xf32>, vector<64x192xf32>, vector<8x192xf32> -> vector<8x192xf32>
    %331 = arith.addf %330, %3 : vector<8x192xf32>
    %332 = arith.addf %329, %331 : vector<8x192xf32>
    %333 = vector.extract_strided_slice %332 {offsets = [0, 0], sizes = [8, 64], strides = [1, 1]} : vector<8x192xf32> to vector<8x64xf32>
    %334 = arith.negf %333 : vector<8x64xf32>
    %335 = math.exp %334 : vector<8x64xf32>
    %cst_96 = arith.constant 1.000000e+00 : f32
    %336 = vector.broadcast %cst_96 : f32 to vector<8x64xf32>
    %337 = arith.addf %336, %335 : vector<8x64xf32>
    %338 = arith.divf %336, %337 : vector<8x64xf32>
    %339 = vector.extract_strided_slice %332 {offsets = [0, 64], sizes = [8, 64], strides = [1, 1]} : vector<8x192xf32> to vector<8x64xf32>
    %340 = arith.negf %339 : vector<8x64xf32>
    %341 = math.exp %340 : vector<8x64xf32>
    %cst_97 = arith.constant 1.000000e+00 : f32
    %342 = vector.broadcast %cst_97 : f32 to vector<8x64xf32>
    %343 = arith.addf %342, %341 : vector<8x64xf32>
    %344 = arith.divf %342, %343 : vector<8x64xf32>
    %345 = vector.extract_strided_slice %329 {offsets = [0, 128], sizes = [8, 64], strides = [1, 1]} : vector<8x192xf32> to vector<8x64xf32>
    %346 = vector.extract_strided_slice %331 {offsets = [0, 128], sizes = [8, 64], strides = [1, 1]} : vector<8x192xf32> to vector<8x64xf32>
    %347 = arith.mulf %338, %346 : vector<8x64xf32>
    %348 = arith.addf %345, %347 : vector<8x64xf32>
    %349 = math.tanh %348 : vector<8x64xf32>
    %cst_98 = arith.constant 1.000000e+00 : f32
    %350 = vector.broadcast %cst_98 : f32 to vector<8x64xf32>
    %351 = arith.subf %350, %344 : vector<8x64xf32>
    %352 = arith.mulf %351, %349 : vector<8x64xf32>
    %353 = arith.mulf %344, %326 : vector<8x64xf32>
    %354 = arith.addf %352, %353 : vector<8x64xf32>
    %355 = arith.index_cast %c7_i32_92 : i32 to index
    %c0_99 = arith.constant 0 : index
    %c0_100 = arith.constant 0 : index
    %356 = vector.load %arg2[%355, %c0_99, %c0_100] : memref<8x8x64xf32, #tpu.memory_space<vmem>>, vector<1x8x64xf32>
    %357 = vector.shape_cast %356 : vector<1x8x64xf32> to vector<8x64xf32>
    %358 = arith.mulf %357, %354 : vector<8x64xf32>
    %359 = vector.extract_strided_slice %358 {offsets = [0, 0], sizes = [8, 32], strides = [1, 1]} : vector<8x64xf32> to vector<8x32xf32>
    %360 = arith.index_cast %c7_i32_92 : i32 to index
    %c0_101 = arith.constant 0 : index
    %c0_102 = arith.constant 0 : index
    %361 = vector.load %arg5[%360, %c0_101, %c0_102] : memref<8x8x64xf32, #tpu.memory_space<vmem>>, vector<1x8x32xf32>
    %362 = vector.shape_cast %361 : vector<1x8x32xf32> to vector<8x32xf32>
    %363 = vector.shape_cast %359 : vector<8x32xf32> to vector<1x8x32xf32>
    tpu.vector_store %arg5[%360, %c0_101, %c0_102], %363 {strides = array<i32>} : memref<8x8x64xf32, #tpu.memory_space<vmem>>, vector<1x8x32xf32>,
    %364 = vector.extract_strided_slice %358 {offsets = [0, 32], sizes = [8, 32], strides = [1, 1]} : vector<8x64xf32> to vector<8x32xf32>
    %c7_i32_103 = arith.constant 7 : i32
    %365 = arith.subi %c7_i32_103, %c7_i32_92 : i32
    %366 = arith.index_cast %365 : i32 to index
    %c0_104 = arith.constant 0 : index
    %c32_105 = arith.constant 32 : index
    %367 = vector.load %arg5[%366, %c0_104, %c32_105] : memref<8x8x64xf32, #tpu.memory_space<vmem>>, vector<1x8x32xf32>
    %368 = vector.shape_cast %367 : vector<1x8x32xf32> to vector<8x32xf32>
    %369 = vector.shape_cast %364 : vector<8x32xf32> to vector<1x8x32xf32>
    tpu.vector_store %arg5[%366, %c0_104, %c32_105], %369 {strides = array<i32>} : memref<8x8x64xf32, #tpu.memory_space<vmem>>, vector<1x8x32xf32>,
    %370 = arith.subf %354, %326 : vector<8x64xf32>
    %371 = arith.mulf %357, %370 : vector<8x64xf32>
    %372 = arith.addf %326, %371 : vector<8x64xf32>
    %c8_i32 = arith.constant 8 : i32
    %373 = vector.extract_strided_slice %372 {offsets = [0, 0], sizes = [8, 32], strides = [1, 1]} : vector<8x64xf32> to vector<8x32xf32>
    %c0_106 = arith.constant 0 : index
    %c0_107 = arith.constant 0 : index
    %c0_108 = arith.constant 0 : index
    %374 = vector.load %arg6[%c0_106, %c0_107, %c0_108] : memref<2x8x32xf32, #tpu.memory_space<vmem>>, vector<1x8x32xf32>
    %375 = vector.shape_cast %374 : vector<1x8x32xf32> to vector<8x32xf32>
    %376 = vector.shape_cast %373 : vector<8x32xf32> to vector<1x8x32xf32>
    tpu.vector_store %arg6[%c0_106, %c0_107, %c0_108], %376 {strides = array<i32>} : memref<2x8x32xf32, #tpu.memory_space<vmem>>, vector<1x8x32xf32>,
    %377 = vector.extract_strided_slice %372 {offsets = [0, 32], sizes = [8, 32], strides = [1, 1]} : vector<8x64xf32> to vector<8x32xf32>
    %c1 = arith.constant 1 : index
    %c0_109 = arith.constant 0 : index
    %c0_110 = arith.constant 0 : index
    %378 = vector.load %arg6[%c1, %c0_109, %c0_110] : memref<2x8x32xf32, #tpu.memory_space<vmem>>, vector<1x8x32xf32>
    %379 = vector.shape_cast %378 : vector<1x8x32xf32> to vector<8x32xf32>
    %380 = vector.shape_cast %377 : vector<8x32xf32> to vector<1x8x32xf32>
    tpu.vector_store %arg6[%c1, %c0_109, %c0_110], %380 {strides = array<i32>} : memref<2x8x32xf32, #tpu.memory_space<vmem>>, vector<1x8x32xf32>,
    return
  }
  func.func @transform_0(%arg0: i32) -> (i32, i32, i32) {
    %c0_i32 = arith.constant 0 : i32
    %c0_i32_0 = arith.constant 0 : i32
    %c0_i32_1 = arith.constant 0 : i32
    return %c0_i32, %arg0, %c0_i32_0 : i32, i32, i32
  }
  func.func @transform_1(%arg0: i32) -> (i32, i32, i32) {
    %c0_i32 = arith.constant 0 : i32
    %c0_i32_0 = arith.constant 0 : i32
    %c0_i32_1 = arith.constant 0 : i32
    return %c0_i32, %arg0, %c0_i32_0 : i32, i32, i32
  }
  func.func @transform_2(%arg0: i32) -> (i32, i32) {
    %c0_i32 = arith.constant 0 : i32
    %c0_i32_0 = arith.constant 0 : i32
    %c0_i32_1 = arith.constant 0 : i32
    return %c0_i32, %c0_i32_0 : i32, i32
  }
  func.func @transform_3(%arg0: i32) -> (i32, i32) {
    %c0_i32 = arith.constant 0 : i32
    %c0_i32_0 = arith.constant 0 : i32
    %c0_i32_1 = arith.constant 0 : i32
    return %c0_i32, %c0_i32_0 : i32, i32
  }
  func.func @transform_4(%arg0: i32) -> (i32, i32, i32) {
    %c0_i32 = arith.constant 0 : i32
    %c0_i32_0 = arith.constant 0 : i32
    %c0_i32_1 = arith.constant 0 : i32
    return %c0_i32, %arg0, %c0_i32_0 : i32, i32, i32
  }
  func.func @transform_5(%arg0: i32) -> (i32, i32, i32) {
    %c0_i32 = arith.constant 0 : i32
    %c0_i32_0 = arith.constant 0 : i32
    %c0_i32_1 = arith.constant 0 : i32
    return %c0_i32, %arg0, %c0_i32_0 : i32, i32, i32
  }
}

</mosaic_0001>

<bundles_post_ra>
// kernel: tpu_custom_call.1
= control target key start
LH: loop header
LB: loop body
LE: loop exit
PB: predicated region body
PF: predicated region fallthrough
CT: control target
= control target key end

     0   :  { %11 = vsyncpa [#allocation3], 0  ;;  %s1681_s0 = inlined_call_operand.hbm [shape: f32[8,8,192], index: 0, kind: input, shape index: {}]   ;;  %s1682_s1 = inlined_call_operand.hbm [shape: f32[8,8,64], index: 1, kind: input, shape index: {}]   ;;  %s1683_s2 = inlined_call_operand.hbm [shape: f32[64,192], index: 2, kind: input, shape index: {}]   ;;  %s1684_s3 = inlined_call_operand.vmem [shape: f32[1,192], index: 3, kind: input, shape index: {}]   ;;  %s1685_s4 = inlined_call_operand.hbm [shape: f32[8,8,64], index: 4, kind: output, shape index: {0}]   ;;  %s1686_s5 = inlined_call_operand.hbm [shape: f32[2,8,32], index: 5, kind: output, shape index: {1}]  }
   0x1   :  { %12 = vsyncpa [#allocation6], 0 }
   0x2   :  { %13 = vsyncpa [#allocation4], 0 }
   0x3   :  { %14 = vsyncpa [#allocation10], 0  ;;  %s1363_s18 = smov [#allocation5]   ;;  %s1245_s22 = scalar_lea.hbm %s1682_s1, 1024 }
   0x4   :  { %s32_s19 = sshll.u32 %s1363_s18, 4  ;;  %p1246_p0 = scmp.ne.s32.totalorder %s1682_s1, %s1245_s22  ;;  %s33_s19 = int_to_ptr.vmem [resolvable:$true] %s32_s19 }
   0x5   :  { %p1249_p1 = scmp.lt.u32.totalorder %s1245_s22, %s1682_s1 }
   0x7   :  { %p1251_p2 = pnand %p1249_p1, %p1246_p0 }
   0x9   :  { %1254 = shalt.err (!%p1251_p2)
}
   0xa   :  { %s1255_s27 = scalar_lea.vmem %s33_s19, 1024  ;;  %p1260_p4 = scmp.lt.s32.totalorder %s33_s19, %s33_s19 }
   0xb   :  { %p1256_p3 = scmp.ne.s32.totalorder %s33_s19, %s1255_s27  ;;  %p1261_p5 = scmp.lt.s32.totalorder %s1255_s27, %s1255_s27 }
   0xd   :  { %p1262_p6 = por %p1261_p5, %p1260_p4 }
   0xf   :  { %p1263_p7 = pnand %p1262_p6, %p1256_p3 }
  0x11   :  { %1266 = shalt.err (!%p1263_p7)
}
  0x12   :  { %s1364_s28 = smov 128   ;;  %s1365_s29 = smov 8  }
  0x13   :  { %38 = dma.hbm_to_vmem [thread:$0]  %s1682_s1, 1024, %s33_s19, [#allocation6], %s1364_s28, %s1364_s28, %s1365_s29  }
  0x14   :  { %s1366_s7 = smov [#allocation2]   ;;  %s1267_s11 = scalar_lea.hbm %s1681_s0, 2048 }
  0x15   :  { %s20_s8 = sshll.u32 %s1366_s7, 4  ;;  %p1268_p8 = scmp.ne.s32.totalorder %s1681_s0, %s1267_s11  ;;  %s21_s8 = int_to_ptr.vmem [resolvable:$true] %s20_s8 }
  0x16   :  { %p1271_p9 = scmp.lt.u32.totalorder %s1267_s11, %s1681_s0 }
  0x18   :  { %p1273_p10 = pnand %p1271_p9, %p1268_p8 }
  0x1a   :  { %1276 = shalt.err (!%p1273_p10)
}
  0x1b   :  { %s1277_s16 = scalar_lea.vmem %s21_s8, 2048  ;;  %p1282_p12 = scmp.lt.s32.totalorder %s21_s8, %s21_s8 }
  0x1c   :  { %p1278_p11 = scmp.ne.s32.totalorder %s21_s8, %s1277_s16  ;;  %p1283_p13 = scmp.lt.s32.totalorder %s1277_s16, %s1277_s16 }
  0x1e   :  { %p1284_p0 = por %p1283_p13, %p1282_p12 }
  0x20   :  { %p1285_p1 = pnand %p1284_p0, %p1278_p11 }
  0x22   :  { %1288 = shalt.err (!%p1285_p1)
}
  0x23   :  { %s1367_s1 = smov 256   ;;  %s1368_s17 = smov 16  }
  0x24   :  { %26 = dma.hbm_to_vmem [thread:$0]  %s1681_s0, 2048, %s21_s8, [#allocation3], %s1367_s1, %s1367_s1, %s1368_s17  }
  0x25   :  { %s1369_s20 = smov [#allocation7]   ;;  %s1289_s24 = scalar_lea.hbm %s1683_s2, 2048 }
  0x26   :  { %s44_s21 = sshll.u32 %s1369_s20, 4  ;;  %p1290_p2 = scmp.ne.s32.totalorder %s1683_s2, %s1289_s24  ;;  %s45_s21 = int_to_ptr.vmem [resolvable:$true] %s44_s21 }
  0x27   :  { %p1293_p3 = scmp.lt.u32.totalorder %s1289_s24, %s1683_s2 }
  0x29   :  { %p1295_p4 = pnand %p1293_p3, %p1290_p2 }
  0x2b   :  { %1298 = shalt.err (!%p1295_p4)
}
  0x2c   :  { %s1299_s6 = scalar_lea.vmem %s45_s21, 2048  ;;  %p1304_p6 = scmp.lt.s32.totalorder %s45_s21, %s45_s21 }
  0x2d   :  { %p1300_p5 = scmp.ne.s32.totalorder %s45_s21, %s1299_s6  ;;  %p1305_p7 = scmp.lt.s32.totalorder %s1299_s6, %s1299_s6 }
  0x2f   :  { %p1306_p8 = por %p1305_p7, %p1304_p6 }
  0x31   :  { %p1307_p9 = pnand %p1306_p8, %p1300_p5 }
  0x33   :  { %1310 = shalt.err (!%p1307_p9)
}
  0x34   :  { %50 = dma.hbm_to_vmem [thread:$0]  %s1683_s2, 2048, %s45_s21, [#allocation6], %s1367_s1, %s1367_s1, %s1368_s17  }
  0x35   :  { %1355 = dma.done.wait [#allocation3], 2048  }
  0x36   :  { %1356 = vsyncadd [#allocation3], 4294965248 }
  0x37   :  { %1357 = dma.done.wait [#allocation6], 3072  }
  0x38   :  { %1358 = vsyncadd [#allocation6], 4294964224  ;;  %v1370_v0 = vmov 0.0   ;;  %v63_v1 = vld [vmem:[#allocation7 + $0x8] sm:$0xff]  ;;  %v65_v2 = vld [vmem:[#allocation7 + $0x18] sm:$0xff]  ;;  %v80_v25 = vlaneseq  ;;  %vm92_vm0 = vcmask 523264  }
  0x39   :  { %160 = vmatprep.mubr.f32.mxu0 %v1370_v0  ;;  %267 = vmatprep.mubr.f32.mxu1 %v1370_v0  ;;  %v62_v3 = vld [vmem:[#allocation7] sm:$0xff]  ;;  %v1446_v4 = vpack.c.bf16 %v65_v2, %v63_v1  ;;  %v64_v5 = vld [vmem:[#allocation7 + $0x10] sm:$0xff]  ;;  %v67_v6 = vld [vmem:[#allocation7 + $0x28] sm:$0xff]  ;;  %vm191_vm1 = vcmask 261120   ;;  %vm194_vm2 = vcmask 523520   ;;  %s1372_s9 = smov 96  }
  0x3a   :  { %v69_v7 = vld [vmem:[#allocation7 + $0x38] sm:$0xff]  ;;  %v1448_v8 = vpack.c.bf16 %v64_v5, %v62_v3  ;;  %v66_v10 = vld [vmem:[#allocation7 + $0x20] sm:$0xff]  ;;  %v68_v11 = vld [vmem:[#allocation7 + $0x30] sm:$0xff]  ;;  %v81_v26 = vshrl.u32 %v80_v25, 7  ;;  %s1373_s10 = smov [#allocation8]  }
  0x3b   :  { %v1450_v9 = vpack.c.bf16 %v69_v7, %v67_v6  ;;  %v71_v12 = vld [vmem:[#allocation7 + $0x48] sm:$0xff]  ;;  %1058 = vmatprep.subr.bf16.mxu0 %v1446_v4  ;;  %v73_v13 = vld [vmem:[#allocation7 + $0x58] sm:$0xff]  ;;  %1074 = vmatprep.subr.bf16.mxu1 %v1446_v4  ;;  %v1455_v14 = vpack.c.bf16 %v68_v11, %v66_v10  ;;  %v70_v16 = vld [vmem:[#allocation7 + $0x40] sm:$0xff]  ;;  %s1013_s11 = sshll.u32 %s1373_s10, 4  ;;  %s1014_s11 = int_to_ptr.vmem [resolvable:$true] %s1013_s11 }
  0x3c   :  { %1060 = vmatpush1.bf16.msra.mxu0 %v1448_v8  ;;  %1076 = vmatpush1.bf16.msra.mxu1 %v1448_v8  ;;  %v1459_v15 = vpack.c.bf16 %v73_v13, %v71_v12  ;;  %v72_v17 = vld [vmem:[#allocation7 + $0x50] sm:$0xff]  ;;  %v75_v18 = vld [vmem:[#allocation7 + $0x68] sm:$0xff]  ;;  %v77_v19 = vld [vmem:[#allocation7 + $0x78] sm:$0xff]  ;;  %v82_v27 = vsub.s32 0, %v81_v26  ;;  %v86_v38 = vsub.s32 1, %v81_v26  ;;  %s1311_s12 = scalar_lea.vmem %s1014_s11, 1024  ;;  %p1316_p11 = scmp.lt.s32.totalorder %s1014_s11, %s1014_s11 }
  0x3d   :  { %1062 = vmatprep.subr.bf16.mxu0 %v1450_v9  ;;  %1078 = vmatprep.subr.bf16.mxu1 %v1450_v9  ;;  %v1463_v20 = vpack.c.bf16 %v72_v17, %v70_v16  ;;  %v1467_v21 = vpack.c.bf16 %v77_v19, %v75_v18  ;;  %v74_v22 = vld [vmem:[#allocation7 + $0x60] sm:$0xff]  ;;  %v76_v23 = vld [vmem:[#allocation7 + $0x70] sm:$0xff]  ;;  %v91_v42 = vld [vmem:[#allocation2 + $0x8] sm:$0xff]  ;;  %p1312_p10 = scmp.ne.s32.totalorder %s1014_s11, %s1311_s12  ;;  %p1317_p12 = scmp.lt.s32.totalorder %s1311_s12, %s1311_s12 }
  0x3e   :  { %v1471_v24 = vpack.c.bf16 %v76_v23, %v74_v22  ;;  %v78_v28 = vld [vmem:[%s1684_s3] sm:$0x3]  ;;  %s1371_s3 = smov 64   ;;  %v198_v54 = vld [vmem:[#allocation2 + $0x10] sm:$0xff]  ;;  %v199_v1 = vld [vmem:[#allocation2 + $0x18] sm:$0xff] }
  0x3f   :  { %v1493_v29 = vrot.slane %v78_v28, %v82_v27  ;;  %v90_v30 = vld [vmem:[#allocation2] sm:$0xff]  ;;  %v1496_v39 = vrot.slane %v78_v28, %v86_v38  ;;  %v1521_v17 = vld [vmem:[#allocation5 + $0x8] sm:$0xff]  ;;  %p1318_p13 = por %p1317_p12, %p1316_p11 }
  0x40   :  { %1064 = vmatpush1.bf16.msra.mxu0 %v1455_v14  ;;  %1080 = vmatpush1.bf16.msra.mxu1 %v1455_v14  ;;  %v185_v51 = vld [vmem:[#allocation5] sm:$0xff] }
  0x41   :  { %1066 = vmatprep.subr.bf16.mxu0 %v1459_v15  ;;  %1082 = vmatprep.subr.bf16.mxu1 %v1459_v15  ;;  %v314_v23 = vld [vmem:[#allocation2 + $0x20] sm:$0xff]  ;;  %p1319_p0 = pnand %p1318_p13, %p1312_p10 }
  0x44   :  { %1068 = vmatpush1.bf16.msra.mxu0 %v1463_v20  ;;  %1084 = vmatpush1.bf16.msra.mxu1 %v1463_v20 }
  0x45   :  { %1070 = vmatprep.subr.bf16.mxu0 %v1467_v21  ;;  %1086 = vmatprep.subr.bf16.mxu1 %v1467_v21 }
  0x48   :  { %1072 = vmatpush1.bf16.msra.mxu0 %v1471_v24  ;;  %1088 = vmatpush1.bf16.msra.mxu1 %v1471_v24 }
  0x49   :  { %1090 = vmatprep.subr.bf16.mxu0 %v1446_v4  ;;  %1106 = vmatprep.subr.bf16.mxu1 %v1446_v4 }
  0x4b   :  { %161 = vmatmul.mubr.f32.vlgmr.msra.gmra.mrb[0].mxu0 %v1370_v0 }
  0x4c   :  { %1092 = vmatpush1.bf16.msra.mxu0 %v1448_v8  ;;  %383 = vmatprep.mubr.f32.mxu0 %v1370_v0 }
  0x4d   :  { %1094 = vmatprep.subr.bf16.mxu0 %v1450_v9 }
  0x50   :  { %1096 = vmatpush1.bf16.msra.mxu0 %v1455_v14 }
  0x51   :  { %1098 = vmatprep.subr.bf16.mxu0 %v1459_v15 }
  0x54   :  { %1100 = vmatpush1.bf16.msra.mxu0 %v1463_v20 }
  0x55   :  { %1102 = vmatprep.subr.bf16.mxu0 %v1467_v21 }
  0x58   :  { %1104 = vmatpush1.bf16.msra.mxu0 %v1471_v24 }
  0x59   :  { %1122 = vmatprep.subr.bf16.mxu0 %v1446_v4 }
 0x11e   :  { %v162_v31 = vpop.f32.mrb[0].mxu0 }
 0x11f   :  { %v163_v32 = vadd.f32 %v162_v31, %v1493_v29  ;;  %v164_v33 = vpop.f32.mrb[1].mxu0 }
 0x120   :  { %v165_v40 = vadd.f32 %v164_v33, %v1496_v39 }
 0x121   :  { %v167_v34 = vadd.f32 %v163_v32, %v90_v30 }
 0x123   :  { %v1042_v35 = vmul.f32 -1.442695, %v167_v34 }
 0x125   :  { %1197 = vpow2.f32 %v1042_v35  ;;  %v315_v35 = vld [vmem:[#allocation2 + $0x28] sm:$0xff] }
 0x12f   :  { %v1198_v36 = vpop.eup %1197 }
 0x130   :  { %v171_v37 = vadd.f32 1.0, %v1198_v36 }
 0x132   :  { %1199 = vrcp.f32 %v171_v37 }
 0x13c   :  { %v1200_v41 = vpop.eup %1199 }
 0x13d   :  { %v174_v43 = vmul.f32 %v1200_v41, %v165_v40  ;;  %v177_v46 = vsub.f32 1.0, %v1200_v41  ;;  %v183_v48 = vmul.f32 0.0, %v1200_v41 }
 0x13f   :  { %v175_v44 = vadd.f32 %v174_v43, %v91_v42 }
 0x141   :  { %1201 = vtanh.f32 %v175_v44 }
 0x14b   :  { %v1202_v45 = vpop.eup %1201 }
 0x14c   :  { %179 = vrot.lane.b32.xlu0 %v1202_v45, %s1371_s3 }
 0x1be   :  { %v180_v47 = vpop.permute.xlu0 %179 }
 0x1bf   :  { %v182_v49 = vmul.f32 %v180_v47, %v177_v46  ;;  %v1542_v47 = vld [vmem:[#allocation5 + $0x10] sm:$0xff] }
 0x1c1   :  { %v184_v50 = vadd.f32 %v183_v48, %v182_v49 }
 0x1c3   :  { %187 = vrot.lane.b32.xlu0 %v184_v50, %s1371_s3 }
 0x235   :  { %v188_v52 = vpop.permute.xlu0 %187 }
 0x236   :  { %v190_v53 = vmul.f32 %v188_v52, %v185_v51  ;;  %v430_v51 = vld [vmem:[#allocation2 + $0x30] sm:$0xff] }
 0x238   :  { %1043 = vmatmul.mubr.msk.f32.vlgmr.msra.gmra.mrb[0].mxu1 %vm92_vm0, %v190_v53  ;;  %192 = vst.msk [vmem:[#allocation8] sm:$0xff] %vm191_vm1, %v190_v53 }
 0x239   :  { %195 = vst.msk [vmem:[#allocation8 + $0x38] sm:$0xff] %vm194_vm2, %v190_v53  ;;  %1108 = vmatpush1.bf16.msra.mxu1 %v1448_v8  ;;  %499 = vmatprep.mubr.f32.mxu1 %v1370_v0 }
 0x23a   :  { %1110 = vmatprep.subr.bf16.mxu1 %v1450_v9 }
 0x23d   :  { %1112 = vmatpush1.bf16.msra.mxu1 %v1455_v14 }
 0x23e   :  { %1114 = vmatprep.subr.bf16.mxu1 %v1459_v15 }
 0x241   :  { %1116 = vmatpush1.bf16.msra.mxu1 %v1463_v20 }
 0x242   :  { %1118 = vmatprep.subr.bf16.mxu1 %v1467_v21 }
 0x245   :  { %1120 = vmatpush1.bf16.msra.mxu1 %v1471_v24 }
 0x246   :  { %1138 = vmatprep.subr.bf16.mxu1 %v1446_v4 }
 0x30b   :  { %v269_v55 = vpop.f32.mrb[0].mxu1 }
 0x30c   :  { %v270_v56 = vadd.f32 %v269_v55, %v1493_v29  ;;  %v271_v57 = vpop.f32.mrb[1].mxu1 }
 0x30d   :  { %v272_v62 = vadd.f32 %v271_v57, %v1496_v39 }
 0x30e   :  { %v274_v58 = vadd.f32 %v270_v56, %v198_v54 }
 0x310   :  { %v1044_v59 = vmul.f32 -1.442695, %v274_v58 }
 0x312   :  { %1203 = vpow2.f32 %v1044_v59 }
 0x31c   :  { %v1204_v60 = vpop.eup %1203 }
 0x31d   :  { %v278_v61 = vadd.f32 1.0, %v1204_v60 }
 0x31f   :  { %1205 = vrcp.f32 %v278_v61  ;;  %v431_v61 = vld [vmem:[#allocation2 + $0x38] sm:$0xff] }
 0x329   :  { %v1206_v63 = vpop.eup %1205 }
 0x32a   :  { %v281_v2 = vmul.f32 %v1206_v63, %v272_v62  ;;  %v284_v7 = vsub.f32 1.0, %v1206_v63 }
 0x32c   :  { %v282_v3 = vadd.f32 %v281_v2, %v199_v1 }
 0x32e   :  { %1207 = vtanh.f32 %v282_v3 }
 0x338   :  { %v1208_v5 = vpop.eup %1207 }
 0x339   :  { %286 = vrot.lane.b32.xlu1 %v1208_v5, %s1371_s3 }
 0x33d   :  { %290 = vrot.lane.b32.xlu1 %v190_v53, %s1371_s3 }
 0x3ab   :  { %v287_v6 = vpop.permute.xlu1 %286 }
 0x3ac   :  { %v289_v11 = vmul.f32 %v287_v6, %v284_v7 }
 0x3af   :  { %v291_v10 = vpop.permute.xlu1 %290 }
 0x3b0   :  { %v293_v12 = vmul.f32 %v1206_v63, %v291_v10 }
 0x3b2   :  { %v1517_v13 = vadd.f32 %v293_v12, %v289_v11  ;;  %v1563_v11 = vld [vmem:[#allocation5 + $0x18] sm:$0xff] }
 0x3b4   :  { %v306_v16 = vsub.f32 %v1517_v13, %v291_v10 }
 0x3b6   :  { %308 = vrot.lane.b32.xlu0 %v306_v16, %s1371_s3 }
 0x428   :  { %v309_v18 = vpop.permute.xlu0 %308 }
 0x429   :  { %v311_v19 = vmul.f32 %v309_v18, %v1521_v17 }
 0x42b   :  { %v312_v22 = vadd.f32 %v311_v19, %v190_v53  ;;  %v546_v19 = vld [vmem:[#allocation2 + $0x40] sm:$0xff] }
 0x42d   :  { %406 = vrot.lane.b32.xlu0 %v312_v22, %s1371_s3  ;;  %1045 = vmatmul.mubr.msk.f32.vlgmr.msra.gmra.mrb[2].mxu0 %vm92_vm0, %v312_v22 }
 0x42e   :  { %1124 = vmatpush1.bf16.msra.mxu0 %v1448_v8  ;;  %615 = vmatprep.mubr.f32.mxu0 %v1370_v0 }
 0x42f   :  { %1126 = vmatprep.subr.bf16.mxu0 %v1450_v9 }
 0x432   :  { %1128 = vmatpush1.bf16.msra.mxu0 %v1455_v14 }
 0x433   :  { %1130 = vmatprep.subr.bf16.mxu0 %v1459_v15 }
 0x436   :  { %1132 = vmatpush1.bf16.msra.mxu0 %v1463_v20 }
 0x437   :  { %1134 = vmatprep.subr.bf16.mxu0 %v1467_v21 }
 0x43a   :  { %1136 = vmatpush1.bf16.msra.mxu0 %v1471_v24 }
 0x43b   :  { %1154 = vmatprep.subr.bf16.mxu0 %v1446_v4 }
 0x49f   :  { %v407_v41 = vpop.permute.xlu0 %406 }
 0x500   :  { %v385_v25 = vpop.f32.mrb[2].mxu0 }
 0x501   :  { %v386_v26 = vadd.f32 %v385_v25, %v1493_v29  ;;  %v387_v27 = vpop.f32.mrb[3].mxu0 }
 0x502   :  { %v388_v33 = vadd.f32 %v387_v27, %v1496_v39 }
 0x503   :  { %v390_v28 = vadd.f32 %v386_v26, %v314_v23 }
 0x505   :  { %v1046_v30 = vmul.f32 -1.442695, %v390_v28 }
 0x507   :  { %1209 = vpow2.f32 %v1046_v30 }
 0x511   :  { %v1210_v31 = vpop.eup %1209 }
 0x512   :  { %v394_v32 = vadd.f32 1.0, %v1210_v31 }
 0x514   :  { %1211 = vrcp.f32 %v394_v32 }
 0x51e   :  { %v1212_v34 = vpop.eup %1211 }
 0x51f   :  { %v397_v36 = vmul.f32 %v1212_v34, %v388_v33  ;;  %v400_v40 = vsub.f32 1.0, %v1212_v34  ;;  %v409_v43 = vmul.f32 %v1212_v34, %v407_v41  ;;  %v547_v33 = vld [vmem:[#allocation2 + $0x48] sm:$0xff] }
 0x521   :  { %v398_v37 = vadd.f32 %v397_v36, %v315_v35 }
 0x523   :  { %1213 = vtanh.f32 %v398_v37 }
 0x52d   :  { %v1214_v38 = vpop.eup %1213 }
 0x52e   :  { %402 = vrot.lane.b32.xlu1 %v1214_v38, %s1371_s3 }
 0x5a0   :  { %v403_v42 = vpop.permute.xlu1 %402 }
 0x5a1   :  { %v405_v44 = vmul.f32 %v403_v42, %v400_v40 }
 0x5a3   :  { %v1538_v45 = vadd.f32 %v409_v43, %v405_v44 }
 0x5a5   :  { %v422_v46 = vsub.f32 %v1538_v45, %v407_v41 }
 0x5a7   :  { %424 = vrot.lane.b32.xlu1 %v422_v46, %s1371_s3  ;;  %v1583_v46 = vld [vmem:[#allocation5 + $0x20] sm:$0xff] }
 0x619   :  { %v425_v48 = vpop.permute.xlu1 %424 }
 0x61a   :  { %v427_v49 = vmul.f32 %v425_v48, %v1542_v47 }
 0x61c   :  { %v428_v50 = vadd.f32 %v427_v49, %v312_v22 }
 0x61e   :  { %522 = vrot.lane.b32.xlu1 %v428_v50, %s1371_s3  ;;  %1047 = vmatmul.mubr.msk.f32.vlgmr.msra.gmra.mrb[2].mxu1 %vm92_vm0, %v428_v50 }
 0x61f   :  { %1140 = vmatpush1.bf16.msra.mxu1 %v1448_v8  ;;  %729 = vmatprep.mubr.f32.mxu1 %v1370_v0 }
 0x620   :  { %1142 = vmatprep.subr.bf16.mxu1 %v1450_v9 }
 0x623   :  { %1144 = vmatpush1.bf16.msra.mxu1 %v1455_v14 }
 0x624   :  { %1146 = vmatprep.subr.bf16.mxu1 %v1459_v15 }
 0x627   :  { %1148 = vmatpush1.bf16.msra.mxu1 %v1463_v20 }
 0x628   :  { %1150 = vmatprep.subr.bf16.mxu1 %v1467_v21 }
 0x62b   :  { %1152 = vmatpush1.bf16.msra.mxu1 %v1471_v24 }
 0x62c   :  { %1170 = vmatprep.subr.bf16.mxu1 %v1446_v4 }
 0x690   :  { %v523_v2 = vpop.permute.xlu1 %522 }
 0x6f1   :  { %v501_v52 = vpop.f32.mrb[2].mxu1 }
 0x6f2   :  { %v502_v53 = vadd.f32 %v501_v52, %v1493_v29  ;;  %v503_v54 = vpop.f32.mrb[3].mxu1 }
 0x6f3   :  { %v504_v59 = vadd.f32 %v503_v54, %v1496_v39 }
 0x6f4   :  { %v506_v55 = vadd.f32 %v502_v53, %v430_v51  ;;  %v660_v51 = vld [vmem:[#allocation2 + $0x50] sm:$0xff] }
 0x6f6   :  { %v1048_v56 = vmul.f32 -1.442695, %v506_v55 }
 0x6f8   :  { %1215 = vpow2.f32 %v1048_v56  ;;  %v661_v56 = vld [vmem:[#allocation2 + $0x58] sm:$0xff] }
 0x702   :  { %v1216_v57 = vpop.eup %1215 }
 0x703   :  { %v510_v58 = vadd.f32 1.0, %v1216_v57 }
 0x705   :  { %1217 = vrcp.f32 %v510_v58 }
 0x70f   :  { %v1218_v60 = vpop.eup %1217 }
 0x710   :  { %v513_v62 = vmul.f32 %v1218_v60, %v504_v59  ;;  %v516_v4 = vsub.f32 1.0, %v1218_v60  ;;  %v525_v5 = vmul.f32 %v1218_v60, %v523_v2 }
 0x712   :  { %v514_v63 = vadd.f32 %v513_v62, %v431_v61 }
 0x714   :  { %1219 = vtanh.f32 %v514_v63 }
 0x71e   :  { %v1220_v1 = vpop.eup %1219 }
 0x71f   :  { %518 = vrot.lane.b32.xlu0 %v1220_v1, %s1371_s3  ;;  %v1600_v1 = vld [vmem:[#allocation5 + $0x28] sm:$0xff] }
 0x791   :  { %v519_v3 = vpop.permute.xlu0 %518 }
 0x792   :  { %v521_v6 = vmul.f32 %v519_v3, %v516_v4 }
 0x794   :  { %v1559_v7 = vadd.f32 %v525_v5, %v521_v6  ;;  %v774_v5 = vld [vmem:[#allocation2 + $0x60] sm:$0xff] }
 0x796   :  { %v538_v10 = vsub.f32 %v1559_v7, %v523_v2 }
 0x798   :  { %540 = vrot.lane.b32.xlu0 %v538_v10, %s1371_s3 }
 0x80a   :  { %v541_v12 = vpop.permute.xlu0 %540 }
 0x80b   :  { %v543_v16 = vmul.f32 %v541_v12, %v1563_v11 }
 0x80d   :  { %v544_v18 = vadd.f32 %v543_v16, %v428_v50 }
 0x80f   :  { %638 = vrot.lane.b32.xlu0 %v544_v18, %s1371_s3  ;;  %1049 = vmatmul.mubr.msk.f32.vlgmr.msra.gmra.mrb[4].mxu0 %vm92_vm0, %v544_v18 }
 0x810   :  { %1156 = vmatpush1.bf16.msra.mxu0 %v1448_v8  ;;  %843 = vmatprep.mubr.f32.mxu0 %v1370_v0 }
 0x811   :  { %1158 = vmatprep.subr.bf16.mxu0 %v1450_v9 }
 0x814   :  { %1160 = vmatpush1.bf16.msra.mxu0 %v1455_v14 }
 0x815   :  { %1162 = vmatprep.subr.bf16.mxu0 %v1459_v15 }
 0x818   :  { %1164 = vmatpush1.bf16.msra.mxu0 %v1463_v20 }
 0x819   :  { %1166 = vmatprep.subr.bf16.mxu0 %v1467_v21 }
 0x81c   :  { %1168 = vmatpush1.bf16.msra.mxu0 %v1471_v24 }
 0x881   :  { %v639_v38 = vpop.permute.xlu0 %638 }
 0x8e2   :  { %v617_v22 = vpop.f32.mrb[4].mxu0 }
 0x8e3   :  { %v618_v23 = vadd.f32 %v617_v22, %v1493_v29  ;;  %v619_v25 = vpop.f32.mrb[5].mxu0 }
 0x8e4   :  { %v620_v31 = vadd.f32 %v619_v25, %v1496_v39 }
 0x8e5   :  { %v622_v26 = vadd.f32 %v618_v23, %v546_v19 }
 0x8e7   :  { %v1050_v27 = vmul.f32 -1.442695, %v622_v26  ;;  %v775_v26 = vld [vmem:[#allocation2 + $0x68] sm:$0xff] }
 0x8e9   :  { %1221 = vpow2.f32 %v1050_v27 }
 0x8f3   :  { %v1222_v28 = vpop.eup %1221 }
 0x8f4   :  { %v626_v30 = vadd.f32 1.0, %v1222_v28 }
 0x8f6   :  { %1223 = vrcp.f32 %v626_v30 }
 0x900   :  { %v1224_v32 = vpop.eup %1223 }
 0x901   :  { %v629_v34 = vmul.f32 %v1224_v32, %v620_v31  ;;  %v632_v37 = vsub.f32 1.0, %v1224_v32  ;;  %v641_v41 = vmul.f32 %v1224_v32, %v639_v38 }
 0x903   :  { %v630_v35 = vadd.f32 %v629_v34, %v547_v33 }
 0x905   :  { %1225 = vtanh.f32 %v630_v35 }
 0x90f   :  { %v1226_v36 = vpop.eup %1225 }
 0x910   :  { %634 = vrot.lane.b32.xlu1 %v1226_v36, %s1371_s3 }
 0x982   :  { %v635_v40 = vpop.permute.xlu1 %634 }
 0x983   :  { %v637_v42 = vmul.f32 %v635_v40, %v632_v37 }
 0x985   :  { %v1579_v43 = vadd.f32 %v641_v41, %v637_v42 }
 0x987   :  { %v652_v44 = vsub.f32 %v1579_v43, %v639_v38  ;;  %v1609_v38 = vld [vmem:[#allocation5 + $0x30] sm:$0xff] }
 0x989   :  { %654 = vrot.lane.b32.xlu1 %v652_v44, %s1371_s3 }
 0x9fb   :  { %v655_v48 = vpop.permute.xlu1 %654 }
 0x9fc   :  { %v657_v49 = vmul.f32 %v655_v48, %v1583_v46 }
 0x9fe   :  { %v658_v50 = vadd.f32 %v657_v49, %v544_v18 }
 0xa00   :  { %752 = vrot.lane.b32.xlu1 %v658_v50, %s1371_s3  ;;  %1051 = vmatmul.mubr.msk.f32.vlgmr.msra.gmra.mrb[4].mxu1 %vm92_vm0, %v658_v50 }
 0xa01   :  { %1172 = vmatpush1.bf16.msra.mxu1 %v1448_v8  ;;  %957 = vmatprep.mubr.f32.mxu1 %v1370_v0 }
 0xa02   :  { %1174 = vmatprep.subr.bf16.mxu1 %v1450_v9 }
 0xa05   :  { %1176 = vmatpush1.bf16.msra.mxu1 %v1455_v14 }
 0xa06   :  { %1178 = vmatprep.subr.bf16.mxu1 %v1459_v15 }
 0xa09   :  { %1180 = vmatpush1.bf16.msra.mxu1 %v1463_v20 }
 0xa0a   :  { %1182 = vmatprep.subr.bf16.mxu1 %v1467_v21 }
 0xa0d   :  { %1184 = vmatpush1.bf16.msra.mxu1 %v1471_v24 }
 0xa72   :  { %v753_v58 = vpop.permute.xlu1 %752 }
 0xad3   :  { %v731_v52 = vpop.f32.mrb[4].mxu1 }
 0xad4   :  { %v732_v53 = vadd.f32 %v731_v52, %v1493_v29  ;;  %v733_v54 = vpop.f32.mrb[5].mxu1 }
 0xad5   :  { %v734_v14 = vadd.f32 %v733_v54, %v1496_v39 }
 0xad6   :  { %v736_v8 = vadd.f32 %v732_v53, %v660_v51 }
 0xad8   :  { %v1052_v55 = vmul.f32 -1.442695, %v736_v8 }
 0xada   :  { %1227 = vpow2.f32 %v1052_v55 }
 0xae4   :  { %v1228_v0 = vpop.eup %1227 }
 0xae5   :  { %v740_v9 = vadd.f32 1.0, %v1228_v0 }
 0xae7   :  { %1229 = vrcp.f32 %v740_v9 }
 0xaf1   :  { %v1230_v15 = vpop.eup %1229 }
 0xaf2   :  { %v743_v20 = vmul.f32 %v1230_v15, %v734_v14  ;;  %v746_v24 = vsub.f32 1.0, %v1230_v15  ;;  %v755_v60 = vmul.f32 %v1230_v15, %v753_v58  ;;  %v889_v14 = vld [vmem:[#allocation2 + $0x78] sm:$0xff] }
 0xaf4   :  { %v744_v57 = vadd.f32 %v743_v20, %v661_v56 }
 0xaf6   :  { %1231 = vtanh.f32 %v744_v57 }
 0xb00   :  { %v1232_v21 = vpop.eup %1231 }
 0xb01   :  { %748 = vrot.lane.b32.xlu0 %v1232_v21, %s1371_s3 }
 0xb73   :  { %v749_v59 = vpop.permute.xlu0 %748 }
 0xb74   :  { %v751_v61 = vmul.f32 %v749_v59, %v746_v24  ;;  %v986_v59 = vld [vmem:[#allocation5 + $0x38] sm:$0xff] }
 0xb76   :  { %v756_v62 = vadd.f32 %v755_v60, %v751_v61 }
 0xb78   :  { %v766_v63 = vsub.f32 %v756_v62, %v753_v58 }
 0xb7a   :  { %768 = vrot.lane.b32.xlu0 %v766_v63, %s1371_s3 }
 0xbec   :  { %v769_v4 = vpop.permute.xlu0 %768 }
 0xbed   :  { %v771_v2 = vmul.f32 %v769_v4, %v1600_v1 }
 0xbef   :  { %v772_v3 = vadd.f32 %v771_v2, %v658_v50 }
 0xbf1   :  { %866 = vrot.lane.b32.xlu0 %v772_v3, %s1371_s3  ;;  %1053 = vmatmul.mubr.msk.f32.vlgmr.msra.gmra.mrb[6].mxu0 %vm92_vm0, %v772_v3 }
 0xc63   :  { %v867_v32 = vpop.permute.xlu0 %866 }
 0xcc4   :  { %v845_v6 = vpop.f32.mrb[6].mxu0 }
 0xcc5   :  { %v846_v10 = vadd.f32 %v845_v6, %v1493_v29  ;;  %v847_v12 = vpop.f32.mrb[7].mxu0 }
 0xcc6   :  { %v848_v23 = vadd.f32 %v847_v12, %v1496_v39 }
 0xcc7   :  { %v850_v16 = vadd.f32 %v846_v10, %v774_v5 }
 0xcc9   :  { %v1054_v18 = vmul.f32 -1.442695, %v850_v16 }
 0xccb   :  { %1233 = vpow2.f32 %v1054_v18 }
 0xcd5   :  { %v1234_v19 = vpop.eup %1233 }
 0xcd6   :  { %v854_v22 = vadd.f32 1.0, %v1234_v19 }
 0xcd8   :  { %1235 = vrcp.f32 %v854_v22 }
 0xce2   :  { %v1236_v25 = vpop.eup %1235 }
 0xce3   :  { %v857_v27 = vmul.f32 %v1236_v25, %v848_v23  ;;  %v860_v31 = vsub.f32 1.0, %v1236_v25  ;;  %v869_v34 = vmul.f32 %v1236_v25, %v867_v32 }
 0xce5   :  { %v858_v28 = vadd.f32 %v857_v27, %v775_v26 }
 0xce7   :  { %1237 = vtanh.f32 %v858_v28 }
 0xcf1   :  { %v1238_v30 = vpop.eup %1237 }
 0xcf2   :  { %862 = vrot.lane.b32.xlu1 %v1238_v30, %s1371_s3 }
 0xd64   :  { %v863_v33 = vpop.permute.xlu1 %862 }
 0xd65   :  { %v865_v35 = vmul.f32 %v863_v33, %v860_v31 }
 0xd67   :  { %v870_v36 = vadd.f32 %v869_v34, %v865_v35 }
 0xd69   :  { %v880_v37 = vsub.f32 %v870_v36, %v867_v32 }
 0xd6b   :  { %882 = vrot.lane.b32.xlu1 %v880_v37, %s1371_s3 }
 0xddd   :  { %v883_v40 = vpop.permute.xlu1 %882 }
 0xdde   :  { %v885_v41 = vmul.f32 %v883_v40, %v1609_v38 }
 0xde0   :  { %v886_v42 = vadd.f32 %v885_v41, %v772_v3 }
 0xde2   :  { %980 = vrot.lane.b32.xlu1 %v886_v42, %s1371_s3  ;;  %1055 = vmatmul.mubr.msk.f32.vlgmr.msra.gmra.mrb[6].mxu1 %vm92_vm0, %v886_v42 }
 0xde6   :  { %298 = vrot.lane.b32.xlu1 %v1517_v13, %s1371_s3  ;;  %v888_v13 = vld [vmem:[#allocation2 + $0x70] sm:$0xff] }
 0xdea   :  { %530 = vrot.lane.b32.xlu1 %v1559_v7, %s1371_s3 }
 0xdee   :  { %760 = vrot.lane.b32.xlu1 %v756_v62, %s1371_s3 }
 0xe54   :  { %v981_v44 = vpop.permute.xlu1 %980 }
 0xe58   :  { %v299_v48 = vpop.permute.xlu1 %298 }
 0xe59   :  { %v301_v49 = vmul.f32 %v299_v48, %v1521_v17 }
 0xe5b   :  { %303 = vst.msk [vmem:[#allocation8 + $0x8] sm:$0xff] %vm191_vm1, %v301_v49 }
 0xe5c   :  { %305 = vst.msk [vmem:[#allocation8 + $0x30] sm:$0xff] %vm194_vm2, %v301_v49  ;;  %v531_v50 = vpop.permute.xlu1 %530 }
 0xe5d   :  { %v533_v51 = vmul.f32 %v531_v50, %v1563_v11 }
 0xe5f   :  { %535 = vst.msk [vmem:[#allocation8 + $0x18] sm:$0xff] %vm191_vm1, %v533_v51 }
 0xe60   :  { %537 = vst.msk [vmem:[#allocation8 + $0x20] sm:$0xff] %vm194_vm2, %v533_v51 }
 0xeb5   :  { %v959_v52 = vpop.f32.mrb[6].mxu1 }
 0xeb6   :  { %v960_v7 = vadd.f32 %v959_v52, %v1493_v29  ;;  %v961_v53 = vpop.f32.mrb[7].mxu1 }
 0xeb7   :  { %v962_v0 = vadd.f32 %v961_v53, %v1496_v39  ;;  %v761_v39 = vpop.permute.xlu1 %760 }
 0xeb8   :  { %v964_v54 = vadd.f32 %v960_v7, %v888_v13 }
 0xeba   :  { %v1056_v8 = vmul.f32 -1.442695, %v964_v54 }
 0xebc   :  { %1239 = vpow2.f32 %v1056_v8 }
 0xec6   :  { %v1240_v17 = vpop.eup %1239 }
 0xec7   :  { %v968_v55 = vadd.f32 1.0, %v1240_v17 }
 0xec9   :  { %1241 = vrcp.f32 %v968_v55 }
 0xed3   :  { %v1242_v9 = vpop.eup %1241 }
 0xed4   :  { %v971_v11 = vmul.f32 %v1242_v9, %v962_v0  ;;  %v974_v20 = vsub.f32 1.0, %v1242_v9  ;;  %v983_v29 = vmul.f32 %v1242_v9, %v981_v44 }
 0xed6   :  { %v972_v15 = vadd.f32 %v971_v11, %v889_v14 }
 0xed8   :  { %1243 = vtanh.f32 %v972_v15 }
 0xee2   :  { %v1244_v56 = vpop.eup %1243 }
 0xee3   :  { %976 = vrot.lane.b32.xlu0 %v1244_v56, %s1371_s3 }
 0xf55   :  { %v977_v57 = vpop.permute.xlu0 %976 }
 0xf56   :  { %v979_v21 = vmul.f32 %v977_v57, %v974_v20 }
 0xf58   :  { %v984_v24 = vadd.f32 %v983_v29, %v979_v21 }
 0xf5a   :  { %988 = vrot.lane.b32.xlu1 %v984_v24, %s1371_s3  ;;  %v994_v58 = vsub.f32 %v984_v24, %v981_v44 }
 0xf5c   :  { %996 = vrot.lane.b32.xlu0 %v994_v58, %s1371_s3 }
 0xf60   :  { %414 = vrot.lane.b32.xlu0 %v1538_v45, %s1371_s3 }
 0xf64   :  { %646 = vrot.lane.b32.xlu0 %v1579_v43, %s1371_s3  ;;  %v763_v43 = vmul.f32 %v761_v39, %v1600_v1 }
 0xf68   :  { %874 = vrot.lane.b32.xlu0 %v870_v36, %s1371_s3 }
 0xfcc   :  { %v989_v60 = vpop.permute.xlu1 %988 }
 0xfcd   :  { %v991_v61 = vmul.f32 %v989_v60, %v986_v59 }
 0xfce   :  { %v997_v62 = vpop.permute.xlu0 %996 }
 0xfcf   :  { %992 = vst.msk [vmem:[#allocation8 + $0x38] sm:$0xff] %vm191_vm1, %v991_v61  ;;  %v999_v63 = vmul.f32 %v997_v62, %v986_v59 }
 0xfd0   :  { %993 = vst.msk [vmem:[#allocation8] sm:$0xff] %vm194_vm2, %v991_v61 }
 0xfd1   :  { %v1000_v4 = vadd.f32 %v999_v63, %v886_v42 }
 0xfd2   :  { %v415_v2 = vpop.permute.xlu0 %414 }
 0xfd3   :  { %1001 = vst.msk [vmem:[#allocation9] sm:$0xff] %vm191_vm1, %v1000_v4  ;;  %v417_v45 = vmul.f32 %v415_v2, %v1542_v47  ;;  %1003 = vrot.lane.b32.xlu0 %v1000_v4, %s1372_s9 }
 0xfd5   :  { %419 = vst.msk [vmem:[#allocation8 + $0x10] sm:$0xff] %vm191_vm1, %v417_v45 }
 0xfd6   :  { %421 = vst.msk [vmem:[#allocation8 + $0x28] sm:$0xff] %vm194_vm2, %v417_v45  ;;  %765 = vst.msk [vmem:[#allocation8 + $0x10] sm:$0xff] %vm194_vm2, %v763_v43  ;;  %v647_v3 = vpop.permute.xlu0 %646 }
 0xfd7   :  { %764 = vst.msk [vmem:[#allocation8 + $0x28] sm:$0xff] %vm191_vm1, %v763_v43  ;;  %v649_v5 = vmul.f32 %v647_v3, %v1583_v46 }
 0xfd9   :  { %650 = vst.msk [vmem:[#allocation8 + $0x20] sm:$0xff] %vm191_vm1, %v649_v5 }
 0xfda   :  { %651 = vst.msk [vmem:[#allocation8 + $0x18] sm:$0xff] %vm194_vm2, %v649_v5  ;;  %v875_v47 = vpop.permute.xlu0 %874 }
 0xfdb   :  { %v877_v1 = vmul.f32 %v875_v47, %v1609_v38 }
 0xfdd   :  { %878 = vst.msk [vmem:[#allocation8 + $0x30] sm:$0xff] %vm191_vm1, %v877_v1 }
 0xfde   :  { %879 = vst.msk [vmem:[#allocation8 + $0x8] sm:$0xff] %vm194_vm2, %v877_v1 }
 0xfdf   :  { %1322 = shalt.err (!%p1319_p0)
}
 0xfe0   :  { %s1323_s15 = scalar_lea.hbm %s1685_s4, 1024 }
 0xfe1   :  { %p1324_p1 = scmp.ne.s32.totalorder %s1685_s4, %s1323_s15  ;;  %p1327_p2 = scmp.lt.u32.totalorder %s1323_s15, %s1685_s4 }
 0xfe3   :  { %p1329_p3 = pnand %p1327_p2, %p1324_p1 }
 0xfe5   :  { %1332 = shalt.err (!%p1329_p3)
}
 0xfe6   :  { %1019 = dma.vmem_to_hbm [thread:$0]  %s1014_s11, 1024, %s1685_s4, [#allocation4], %s1364_s28, %s1364_s28, %s1365_s29  }
 0xfe7   :  { %s1374_s21 = smov [#allocation9]  }
 0xfe8   :  { %s1025_s22 = sshll.u32 %s1374_s21, 4  ;;  %s1026_s22 = int_to_ptr.vmem [resolvable:$true] %s1025_s22 }
 0xfe9   :  { %s1333_s23 = scalar_lea.vmem %s1026_s22, 256  ;;  %p1338_p5 = scmp.lt.s32.totalorder %s1026_s22, %s1026_s22 }
 0xfea   :  { %p1334_p4 = scmp.ne.s32.totalorder %s1026_s22, %s1333_s23  ;;  %p1339_p6 = scmp.lt.s32.totalorder %s1333_s23, %s1333_s23 }
 0xfec   :  { %p1340_p7 = por %p1339_p6, %p1338_p5 }
 0xfee   :  { %p1341_p8 = pnand %p1340_p7, %p1334_p4 }
0x1045   :  { %v1004_v46 = vpop.permute.xlu0 %1003 }
0x1046   :  { %1007 = vst.msk [vmem:[#allocation9 + $0x8] sm:$0xff] %vm191_vm1, %v1004_v46 }
0x1047   :  { %1344 = shalt.err (!%p1341_p8)
}
0x1048   :  { %s1345_s26 = scalar_lea.hbm %s1686_s5, 256 }
0x1049   :  { %p1346_p9 = scmp.ne.s32.totalorder %s1686_s5, %s1345_s26  ;;  %p1349_p10 = scmp.lt.u32.totalorder %s1345_s26, %s1686_s5 }
0x104b   :  { %p1351_p11 = pnand %p1349_p10, %p1346_p9 }
0x104d   :  { %1354 = shalt.err (!%p1351_p11)
}
0x104e   :  { %1031 = dma.vmem_to_hbm [thread:$0]  %s1026_s22, 256, %s1686_s5, [#allocation10], %s1364_s28, %s1364_s28, %s1365_s29  }
0x104f   :  { %1359 = dma.done.wait [#allocation4], 1024  }
0x1050   :  { %1360 = vsyncadd [#allocation4], 4294966272 }
0x1051   :  { %1361 = dma.done.wait [#allocation10], 256  }
0x1052   :  { %1362 = vsyncadd [#allocation10], 4294967040 }
0x1053   :  { %1038 = vsyncpa [#allocation3], 1 }
0x1054   :  { %1039 = vsyncpa [#allocation6], 1 }
0x1055   :  { %1040 = vsyncpa [#allocation4], 1 }
0x1056   :  { %1041 = vsyncpa [#allocation10], 1 }

</bundles_post_ra>
